<compile_context>
chip_gen: v6e
topology: v6e:2x2x1
jax: 0.10.0
libtpu: 0.0.40
codegen_flags: <defaults>
</compile_context>

<pallas_src>
import math

import jax
import jax.numpy as jnp
from jax import lax
from jax.experimental import pallas as pl
from jax.experimental.pallas import tpu as pltpu

N_EMBD = 384          # n_embd in the PyTorch module
HEAD_SIZE = 64        # head_size argument to Head(head_size)
BLOCK_SIZE = 256      # causal mask upper bound (T <= BLOCK_SIZE)


def head_kernel(x_ref, w_ref, o_ref, k_sc, v_sc, m_sc, l_sc, acc_sc):
    """grid = (B, NQ).  One step = one (batch, query-tile) pair.

    x_ref : (1, TQ, C)  f32   this query tile's input rows (cast to bf16 in-kernel)
    w_ref : (C, 3H)     bf16  fused [W_key | W_query * C^-0.5 | W_value], resident
    o_ref : (1, TQ, H)  bf16  output rows for this query tile
    k_sc / v_sc : (NQ, TQ, H) bf16  per-batch K / V tiles, filled as qt advances
    m_sc / l_sc : (TQ, 1) f32       online-softmax running max / denom
    acc_sc      : (TQ, H) f32       output accumulator
    """
    qt = pl.program_id(1)
    TQ = o_ref.shape[1]
    H = o_ref.shape[2]

    # ---- chunked QKV projection: only this tile's TQ rows ---------------------
    x = x_ref[0].astype(jnp.bfloat16)                                   # in-kernel cast
    qkv = jnp.dot(x, w_ref[...], preferred_element_type=jnp.float32)    # (TQ, 3H) f32
    q = qkv[:, H:2 * H].astype(jnp.bfloat16)      # C**-0.5 already folded into W_query
    k_sc[qt] = qkv[:, 0:H].astype(jnp.bfloat16)   # causal => later tiles never needed yet
    v_sc[qt] = qkv[:, 2 * H:3 * H].astype(jnp.bfloat16)

    # ---- online softmax over causal key tiles kt in [0, qt] -------------------
    m_sc[...] = jnp.full(m_sc.shape, -jnp.inf, m_sc.dtype)
    l_sc[...] = jnp.zeros(l_sc.shape, l_sc.dtype)
    acc_sc[...] = jnp.zeros(acc_sc.shape, acc_sc.dtype)

    row0 = qt * TQ
    r = row0 + lax.broadcasted_iota(jnp.int32, (TQ, 1), 0)              # (TQ, 1)

    @pl.loop(0, qt + 1)
    def _(kt):
        k_t = k_sc[kt]                                                  # (TQ, H) bf16
        v_t = v_sc[kt]                                                  # (TQ, H) bf16
        # scores: contract head dim of both operands (no explicit k.T / XLU transpose)
        s = lax.dot_general(q, k_t, dimension_numbers=(((1,), (1,)), ((), ())),
                            preferred_element_type=jnp.float32)         # (TQ, TQ) f32
        # causal mask via broadcast compare; only bites on the diagonal tile kt == qt
        c = kt * TQ + lax.broadcasted_iota(jnp.int32, (1, TQ), 1)       # (1, TQ)
        s = jnp.where(c <= r, s, -jnp.inf)

        m_new = jnp.maximum(m_sc[...], jnp.max(s, axis=-1, keepdims=True))
        alpha = jnp.exp(m_sc[...] - m_new)
        p = jnp.exp(s - m_new)                                          # f32 (v5e-safe)
        l_sc[...] = alpha * l_sc[...] + jnp.sum(p, axis=-1, keepdims=True)
        acc_sc[...] = alpha * acc_sc[...] + jnp.dot(
            p.astype(jnp.bfloat16), v_t, preferred_element_type=jnp.float32)
        m_sc[...] = m_new

    # ---- finalize: normalize (EUP reciprocal) and store bf16 ------------------
    out = acc_sc[...] * pl.reciprocal(l_sc[...], approx=True)
    o_ref[0] = out.astype(o_ref.dtype)


def fuse_head_weights(w_key, w_query, w_value):
    """One-time init: fused (C, 3H) bf16 weight [W_k | W_q * C^-0.5 | W_v].

    Call this once when the module is built -- NOT per forward call.
    The module scales scores by C**-0.5 (C = n_embd); folding it into W_query
    removes the per-token scale multiply from the kernel entirely.
    """
    C = w_key.shape[0]
    scale = C ** (-0.5)
    return jnp.concatenate([w_key, w_query * scale, w_value], axis=1).astype(jnp.bfloat16)


def head_forward(x, w_qkv, *, tq=128):
    """x: (B, T, C) float32.  w_qkv: (C, 3H) bf16 from fuse_head_weights()."""
    B, T, C = x.shape
    H3 = w_qkv.shape[1]
    H = H3 // 3
    assert T <= BLOCK_SIZE
    TQ = min(T, tq)
    assert T % TQ == 0, "T must be a multiple of the query tile"
    NQ = T // TQ

    return pl.pallas_call(
        head_kernel,
        out_shape=jax.ShapeDtypeStruct((B, T, H), jnp.bfloat16),
        grid_spec=pltpu.PrefetchScalarGridSpec(
            num_scalar_prefetch=0,
            grid=(B, NQ),
            in_specs=[
                pl.BlockSpec((1, TQ, C), lambda b, qt: (b, qt, 0)),   # this tile's x rows (f32)
                pl.BlockSpec((C, H3), lambda b, qt: (0, 0)),          # fused weights, resident
            ],
            out_specs=pl.BlockSpec((1, TQ, H), lambda b, qt: (b, qt, 0)),
            scratch_shapes=[
                pltpu.VMEM((NQ, TQ, H), jnp.bfloat16),   # k tiles for current batch
                pltpu.VMEM((NQ, TQ, H), jnp.bfloat16),   # v tiles for current batch
                pltpu.VMEM((TQ, 1), jnp.float32),        # running row max
                pltpu.VMEM((TQ, 1), jnp.float32),        # running row denom
                pltpu.VMEM((TQ, H), jnp.float32),        # output accumulator
            ],
        ),
        compiler_params=pltpu.CompilerParams(
            # batch axis parallel (v7x megacore: keep B >= 2 per chip);
            # qt MUST stay last + "arbitrary": k/v scratch carries across qt.
            dimension_semantics=("parallel", "arbitrary"),
        ),
    )(x, w_qkv)


def reference_forward(x, w_key, w_query, w_value):
    """Pure-JAX f32 reference mirroring the PyTorch forward (eval mode)."""
    B, T, C = x.shape
    k = x @ w_key
    q = x @ w_query
    v = x @ w_value
    wei = (q @ jnp.swapaxes(k, -2, -1)) * C ** (-0.5)
    mask = jnp.tril(jnp.ones((T, T), dtype=bool))
    wei = jnp.where(mask, wei, -jnp.inf)
    wei = jax.nn.softmax(wei, axis=-1)
    return wei @ v


if __name__ == "__main__":
    key = jax.random.PRNGKey(0)
    kx, kk, kq, kv = jax.random.split(key, 4)

    B, T, C, H = 2, 128, N_EMBD, HEAD_SIZE
    assert T <= BLOCK_SIZE

    x = jax.random.normal(kx, (B, T, C), dtype=jnp.float32)

    # Deterministic "Linear(n_embd, head_size, bias=False)" weights stored as (C, H)
    # so that x @ W == PyTorch's x @ weight.T (PyTorch weight shape is (H, C)).
    bound = 1.0 / math.sqrt(C)
    w_key_p = jax.random.uniform(kk, (C, H), jnp.float32, -bound, bound)
    w_query_p = jax.random.uniform(kq, (C, H), jnp.float32, -bound, bound)
    w_value_p = jax.random.uniform(kv, (C, H), jnp.float32, -bound, bound)

    # One-time fusion (module init), then the per-call wrapper does no layout work.
    w_qkv = fuse_head_weights(w_key_p, w_query_p, w_value_p)

    out = jax.block_until_ready(head_forward(x, w_qkv))

    ref = reference_forward(x, w_key_p, w_query_p, w_value_p)
    assert out.shape == (B, T, H)
    # bf16 MXU operands + bf16 output stores (f32 accumulation) -> loosened tolerance.
    assert jnp.allclose(out.astype(jnp.float32), ref, atol=5e-2, rtol=5e-2), \
        "mismatch vs reference"

    print("KERNEL_OK")
</pallas_src>

<mosaic_0001>
module attributes {stable_mosaic.version = 11 : i64} {
  func.func @head_kernel(%arg0: i32, %arg1: i32, %arg2: memref<1x128x384xf32, #tpu.memory_space<vmem>>, %arg3: memref<384x192xbf16, #tpu.memory_space<vmem>>, %arg4: memref<1x128x64xbf16, #tpu.memory_space<vmem>>, %arg5: memref<1x128x64xbf16, #tpu.memory_space<vmem>>, %arg6: memref<1x128x64xbf16, #tpu.memory_space<vmem>>, %arg7: memref<128x1xf32, #tpu.memory_space<vmem>>, %arg8: memref<128x1xf32, #tpu.memory_space<vmem>>, %arg9: memref<128x64xf32, #tpu.memory_space<vmem>>) attributes {dimension_semantics = [#tpu.dimension_semantics<parallel>, #tpu.dimension_semantics<arbitrary>], iteration_bounds = array<i64: 2, 1>, scalar_prefetch = 0 : i64, scratch_operands = 5 : i64, tpu.core_type = #tpu.core_type<tc>, window_params = [{transform_indices = @transform_0, window_bounds = array<i64: 1, 128, 384>}, {pipeline_mode = #tpu.pipeline_mode<synchronous>, transform_indices = @transform_1, window_bounds = array<i64: 384, 192>}, {transform_indices = @transform_2, window_bounds = array<i64: 1, 128, 64>}]} {
    %c0 = arith.constant 0 : index
    %c0_0 = arith.constant 0 : index
    %c0_1 = arith.constant 0 : index
    %0 = vector.load %arg2[%c0, %c0_0, %c0_1] : memref<1x128x384xf32, #tpu.memory_space<vmem>>, vector<1x128x384xf32>
    %1 = vector.shape_cast %0 : vector<1x128x384xf32> to vector<128x384xf32>
    %2 = arith.truncf %1 : vector<128x384xf32> to vector<128x384xbf16>
    %c0_2 = arith.constant 0 : index
    %c0_3 = arith.constant 0 : index
    %3 = vector.load %arg3[%c0_2, %c0_3] : memref<384x192xbf16, #tpu.memory_space<vmem>>, vector<384x192xbf16>
    %cst = arith.constant dense<0.000000e+00> : vector<128x192xf32>
    %4 = tpu.matmul %2, %3, %cst {dimension_numbers = #tpu.dot_dimension_numbers<[1], [0], [0], [1], [0, 0, 1, 1], [], []>} : vector<128x384xbf16>, vector<384x192xbf16>, vector<128x192xf32> -> vector<128x192xf32>
    %5 = vector.extract_strided_slice %4 {offsets = [0, 64], sizes = [128, 64], strides = [1, 1]} : vector<128x192xf32> to vector<128x64xf32>
    %6 = arith.truncf %5 : vector<128x64xf32> to vector<128x64xbf16>
    %7 = vector.extract_strided_slice %4 {offsets = [0, 0], sizes = [128, 64], strides = [1, 1]} : vector<128x192xf32> to vector<128x64xf32>
    %8 = arith.truncf %7 : vector<128x64xf32> to vector<128x64xbf16>
    %9 = arith.index_cast %arg1 : i32 to index
    %c0_4 = arith.constant 0 : index
    %c0_5 = arith.constant 0 : index
    %10 = vector.load %arg5[%9, %c0_4, %c0_5] : memref<1x128x64xbf16, #tpu.memory_space<vmem>>, vector<1x128x64xbf16>
    %11 = vector.shape_cast %10 : vector<1x128x64xbf16> to vector<128x64xbf16>
    %12 = vector.shape_cast %8 : vector<128x64xbf16> to vector<1x128x64xbf16>
    tpu.vector_store %arg5[%9, %c0_4, %c0_5], %12 {strides = array<i32>} : memref<1x128x64xbf16, #tpu.memory_space<vmem>>, vector<1x128x64xbf16>,
    %13 = vector.extract_strided_slice %4 {offsets = [0, 128], sizes = [128, 64], strides = [1, 1]} : vector<128x192xf32> to vector<128x64xf32>
    %14 = arith.truncf %13 : vector<128x64xf32> to vector<128x64xbf16>
    %15 = arith.index_cast %arg1 : i32 to index
    %c0_6 = arith.constant 0 : index
    %c0_7 = arith.constant 0 : index
    %16 = vector.load %arg6[%15, %c0_6, %c0_7] : memref<1x128x64xbf16, #tpu.memory_space<vmem>>, vector<1x128x64xbf16>
    %17 = vector.shape_cast %16 : vector<1x128x64xbf16> to vector<128x64xbf16>
    %18 = vector.shape_cast %14 : vector<128x64xbf16> to vector<1x128x64xbf16>
    tpu.vector_store %arg6[%15, %c0_6, %c0_7], %18 {strides = array<i32>} : memref<1x128x64xbf16, #tpu.memory_space<vmem>>, vector<1x128x64xbf16>,
    %cst_8 = arith.constant 0xFF800000 : f32
    %19 = vector.broadcast %cst_8 : f32 to vector<128x1xf32>
    %c0_9 = arith.constant 0 : index
    %c0_10 = arith.constant 0 : index
    %20 = vector.load %arg7[%c0_9, %c0_10] : memref<128x1xf32, #tpu.memory_space<vmem>>, vector<128x1xf32>
    tpu.vector_store %arg7[%c0_9, %c0_10], %19 {strides = array<i32>} : memref<128x1xf32, #tpu.memory_space<vmem>>, vector<128x1xf32>,
    %cst_11 = arith.constant 0.000000e+00 : f32
    %21 = vector.broadcast %cst_11 : f32 to vector<128x1xf32>
    %c0_12 = arith.constant 0 : index
    %c0_13 = arith.constant 0 : index
    %22 = vector.load %arg8[%c0_12, %c0_13] : memref<128x1xf32, #tpu.memory_space<vmem>>, vector<128x1xf32>
    tpu.vector_store %arg8[%c0_12, %c0_13], %21 {strides = array<i32>} : memref<128x1xf32, #tpu.memory_space<vmem>>, vector<128x1xf32>,
    %cst_14 = arith.constant 0.000000e+00 : f32
    %23 = vector.broadcast %cst_14 : f32 to vector<128x64xf32>
    %c0_15 = arith.constant 0 : index
    %c0_16 = arith.constant 0 : index
    %24 = vector.load %arg9[%c0_15, %c0_16] : memref<128x64xf32, #tpu.memory_space<vmem>>, vector<128x64xf32>
    tpu.vector_store %arg9[%c0_15, %c0_16], %23 {strides = array<i32>} : memref<128x64xf32, #tpu.memory_space<vmem>>, vector<128x64xf32>,
    %c128_i32 = arith.constant 128 : i32
    %25 = arith.muli %arg1, %c128_i32 : i32
    %26 = tpu.iota {dimensions = array<i32: 0>} : vector<128x1xi32>
    %27 = vector.broadcast %25 : i32 to vector<128x1xi32>
    %28 = arith.addi %27, %26 : vector<128x1xi32>
    %c1_i32 = arith.constant 1 : i32
    %29 = arith.addi %arg1, %c1_i32 : i32
    %c0_i32 = arith.constant 0 : i32
    %30 = arith.subi %29, %c0_i32 : i32
    %c1_i32_17 = arith.constant 1 : i32
    %c1_i32_18 = arith.constant 1 : i32
    %31 = arith.subi %c1_i32_17, %c1_i32_18 : i32
    %32 = arith.addi %30, %31 : i32
    %c1_i32_19 = arith.constant 1 : i32
    %33 = arith.divsi %32, %c1_i32_19 : i32
    %c1_i32_20 = arith.constant 1 : i32
    %c0_i32_21 = arith.constant 0 : i32
    %c0_i32_22 = arith.constant 0 : i32
    %34 = arith.subi %33, %c0_i32_22 : i32
    %35 = arith.addi %c0_i32_22, %34 : i32
    %c1_i32_23 = arith.constant 1 : i32
    scf.for %arg10 = %c0_i32_22 to %35 step %c1_i32_23  : i32 {
      %45 = arith.muli %arg10, %c1_i32_20 : i32
      %46 = arith.addi %c0_i32_21, %45 : i32
      %47 = arith.index_cast %46 : i32 to index
      %c0_31 = arith.constant 0 : index
      %c0_32 = arith.constant 0 : index
      %48 = vector.load %arg5[%47, %c0_31, %c0_32] : memref<1x128x64xbf16, #tpu.memory_space<vmem>>, vector<1x128x64xbf16>
      %49 = vector.shape_cast %48 : vector<1x128x64xbf16> to vector<128x64xbf16>
      %50 = arith.index_cast %46 : i32 to index
      %c0_33 = arith.constant 0 : index
      %c0_34 = arith.constant 0 : index
      %51 = vector.load %arg6[%50, %c0_33, %c0_34] : memref<1x128x64xbf16, #tpu.memory_space<vmem>>, vector<1x128x64xbf16>
      %52 = vector.shape_cast %51 : vector<1x128x64xbf16> to vector<128x64xbf16>
      %cst_35 = arith.constant dense<0.000000e+00> : vector<128x128xf32>
      %53 = tpu.matmul %6, %49, %cst_35 {dimension_numbers = #tpu.dot_dimension_numbers<[1], [1], [0], [0], [0, 0, 1, 0], [], []>} : vector<128x64xbf16>, vector<128x64xbf16>, vector<128x128xf32> -> vector<128x128xf32>
      %c128_i32_36 = arith.constant 128 : i32
      %54 = arith.muli %46, %c128_i32_36 : i32
      %55 = tpu.iota {dimensions = array<i32: 1>} : vector<1x128xi32>
      %56 = vector.broadcast %54 : i32 to vector<1x128xi32>
      %57 = arith.addi %56, %55 : vector<1x128xi32>
      %58 = vector.broadcast %57 : vector<1x128xi32> to vector<128x128xi32>
      %59 = vector.broadcast %28 : vector<128x1xi32> to vector<128x128xi32>
      %60 = arith.cmpi sle, %58, %59 : vector<128x128xi32>
      %cst_37 = arith.constant 0xFF800000 : f32
      %61 = vector.broadcast %cst_37 : f32 to vector<128x128xf32>
      %62 = arith.select %60, %53, %61 : vector<128x128xi1>, vector<128x128xf32>
      %c0_38 = arith.constant 0 : index
      %c0_39 = arith.constant 0 : index
      %63 = vector.load %arg7[%c0_38, %c0_39] : memref<128x1xf32, #tpu.memory_space<vmem>>, vector<128x1xf32>
      %cst_40 = arith.constant dense<0xFF800000> : vector<128xf32>
      %64 = vector.multi_reduction <maximumf>, %62, %cst_40 [1] : vector<128x128xf32> to vector<128xf32>
      %65 = vector.shape_cast %64 : vector<128xf32> to vector<128x1xf32>
      %66 = arith.maximumf %63, %65 : vector<128x1xf32>
      %c0_41 = arith.constant 0 : index
      %c0_42 = arith.constant 0 : index
      %67 = vector.load %arg7[%c0_41, %c0_42] : memref<128x1xf32, #tpu.memory_space<vmem>>, vector<128x1xf32>
      %68 = arith.subf %67, %66 : vector<128x1xf32>
      %69 = math.exp %68 : vector<128x1xf32>
      %70 = vector.broadcast %66 : vector<128x1xf32> to vector<128x128xf32>
      %71 = arith.subf %62, %70 : vector<128x128xf32>
      %72 = math.exp %71 : vector<128x128xf32>
      %c0_43 = arith.constant 0 : index
      %c0_44 = arith.constant 0 : index
      %73 = vector.load %arg8[%c0_43, %c0_44] : memref<128x1xf32, #tpu.memory_space<vmem>>, vector<128x1xf32>
      %74 = arith.mulf %69, %73 : vector<128x1xf32>
      %cst_45 = arith.constant dense<0.000000e+00> : vector<128xf32>
      %75 = vector.multi_reduction <add>, %72, %cst_45 [1] : vector<128x128xf32> to vector<128xf32>
      %76 = vector.shape_cast %75 : vector<128xf32> to vector<128x1xf32>
      %77 = arith.addf %74, %76 : vector<128x1xf32>
      %c0_46 = arith.constant 0 : index
      %c0_47 = arith.constant 0 : index
      %78 = vector.load %arg8[%c0_46, %c0_47] : memref<128x1xf32, #tpu.memory_space<vmem>>, vector<128x1xf32>
      tpu.vector_store %arg8[%c0_46, %c0_47], %77 {strides = array<i32>} : memref<128x1xf32, #tpu.memory_space<vmem>>, vector<128x1xf32>,
      %c0_48 = arith.constant 0 : index
      %c0_49 = arith.constant 0 : index
      %79 = vector.load %arg9[%c0_48, %c0_49] : memref<128x64xf32, #tpu.memory_space<vmem>>, vector<128x64xf32>
      %80 = vector.broadcast %69 : vector<128x1xf32> to vector<128x64xf32>
      %81 = arith.mulf %80, %79 : vector<128x64xf32>
      %82 = arith.truncf %72 : vector<128x128xf32> to vector<128x128xbf16>
      %cst_50 = arith.constant dense<0.000000e+00> : vector<128x64xf32>
      %83 = tpu.matmul %82, %52, %cst_50 {dimension_numbers = #tpu.dot_dimension_numbers<[1], [0], [0], [1], [0, 0, 1, 1], [], []>} : vector<128x128xbf16>, vector<128x64xbf16>, vector<128x64xf32> -> vector<128x64xf32>
      %84 = arith.addf %81, %83 : vector<128x64xf32>
      %c0_51 = arith.constant 0 : index
      %c0_52 = arith.constant 0 : index
      %85 = vector.load %arg9[%c0_51, %c0_52] : memref<128x64xf32, #tpu.memory_space<vmem>>, vector<128x64xf32>
      tpu.vector_store %arg9[%c0_51, %c0_52], %84 {strides = array<i32>} : memref<128x64xf32, #tpu.memory_space<vmem>>, vector<128x64xf32>,
      %c0_53 = arith.constant 0 : index
      %c0_54 = arith.constant 0 : index
      %86 = vector.load %arg7[%c0_53, %c0_54] : memref<128x1xf32, #tpu.memory_space<vmem>>, vector<128x1xf32>
      tpu.vector_store %arg7[%c0_53, %c0_54], %66 {strides = array<i32>} : memref<128x1xf32, #tpu.memory_space<vmem>>, vector<128x1xf32>,
    }
    %c0_24 = arith.constant 0 : index
    %c0_25 = arith.constant 0 : index
    %36 = vector.load %arg9[%c0_24, %c0_25] : memref<128x64xf32, #tpu.memory_space<vmem>>, vector<128x64xf32>
    %c0_26 = arith.constant 0 : index
    %c0_27 = arith.constant 0 : index
    %37 = vector.load %arg8[%c0_26, %c0_27] : memref<128x1xf32, #tpu.memory_space<vmem>>, vector<128x1xf32>
    %38 = tpu.reciprocal %37 {approx = true} : vector<128x1xf32> -> vector<128x1xf32>
    %39 = vector.broadcast %38 : vector<128x1xf32> to vector<128x64xf32>
    %40 = arith.mulf %36, %39 : vector<128x64xf32>
    %41 = arith.truncf %40 : vector<128x64xf32> to vector<128x64xbf16>
    %c0_28 = arith.constant 0 : index
    %c0_29 = arith.constant 0 : index
    %c0_30 = arith.constant 0 : index
    %42 = vector.load %arg4[%c0_28, %c0_29, %c0_30] : memref<1x128x64xbf16, #tpu.memory_space<vmem>>, vector<1x128x64xbf16>
    %43 = vector.shape_cast %42 : vector<1x128x64xbf16> to vector<128x64xbf16>
    %44 = vector.shape_cast %41 : vector<128x64xbf16> to vector<1x128x64xbf16>
    tpu.vector_store %arg4[%c0_28, %c0_29, %c0_30], %44 {strides = array<i32>} : memref<1x128x64xbf16, #tpu.memory_space<vmem>>, vector<1x128x64xbf16>,
    return
  }
  func.func @transform_0(%arg0: i32, %arg1: i32) -> (i32, i32, i32) {
    %c0_i32 = arith.constant 0 : i32
    %c0_i32_0 = arith.constant 0 : i32
    return %arg0, %arg1, %c0_i32 : i32, i32, i32
  }
  func.func @transform_1(%arg0: i32, %arg1: i32) -> (i32, i32) {
    %c0_i32 = arith.constant 0 : i32
    %c0_i32_0 = arith.constant 0 : i32
    %c0_i32_1 = arith.constant 0 : i32
    return %c0_i32, %c0_i32_0 : i32, i32
  }
  func.func @transform_2(%arg0: i32, %arg1: i32) -> (i32, i32, i32) {
    %c0_i32 = arith.constant 0 : i32
    %c0_i32_0 = arith.constant 0 : i32
    return %arg0, %arg1, %c0_i32 : i32, i32, i32
  }
}

</mosaic_0001>

<bundles_post_ra>
// kernel: tpu_custom_call.1
= control target key start
LH: loop header
LB: loop body
LE: loop exit
PB: predicated region body
PF: predicated region fallthrough
CT: control target
= control target key end

     0   :  { %7 = vsyncpa [#allocation8], 0  ;;  %s3937_s0 = inlined_call_operand.hbm [shape: f32[2,128,384], index: 0, kind: input, shape index: {}]   ;;  %s3938_s1 = inlined_call_operand.vmem [shape: bf16[384,192], index: 1, kind: input, shape index: {}]   ;;  %s3939_s2 = inlined_call_operand.vmem [shape: bf16[2,128,64], index: 2, kind: output, shape index: {}]  }
   0x1   :  { %9 = vsyncpa [#allocation8 + $0x1], 0  ;;  %s2955_s9 = smov 0   ;;  %s2957_s10 = smov 0  }
   0x2   :  { %s2959_s11 = smov 0   ;;  %s2961_s12 = smov 0  }
   0x3   :  { %s2963_s13 = smov 0   ;;  %s2965_s14 = smov 0  }
   0x4 LB: > { %s2294_s15 = sadd.s32 4294967295, %s2926_s14   ;;  %s27_s16 = sadd.s32 1, %s2922_s13  ;;  %s2926_s14 = sphi %s2965_s14, %s15_s14   ;;  %s2922_s13 = sphi %s2963_s13, %s3998_s13   ;;  %s2918_s12 = sphi %s2961_s12, %s3997_s12   ;;  %s2914_s11 = sphi %s2959_s11, %s3996_s11   ;;  %s2910_s10 = sphi %s2957_s10, %s3995_s10   ;;  %s2906_s9 = sphi %s2955_s9, %s3994_s9  }
   0x5   : > { %p29_p0 = scmp.ge.s32.totalorder %s27_s16, 2  ;;  %s36_s17 = sadd.s32 1, %s2914_s11 }
   0x6   : > { %p43_p1 = scmp.ne.s32.totalorder %s2914_s11, %s2910_s10  ;;  %p44_p2 = scmp.eq.s32.totalorder %s2926_s14, 0 }
   0x7   : > { %s4000_s16 = smov (%p29_p0, %s27_s16), 0  ;;  %p49_p4 = scmp.ne.s32.totalorder %s2910_s10, %s2906_s9 }
   0x8   : > { %p45_p3 = por %p44_p2, %p43_p1  ;;  %s31_s18 = ssub.s32 %s2922_s13, %s4000_s16 }
   0x9   : > { %p50_p5 = scmp.eq.s32.totalorder %s2294_s15, 0  ;;  %p34_p6 = scmp.eq.s32.totalorder %s31_s18, 0 }
   0xa   : > { %p2592_p8 = scmp.lt.s32.totalorder %s2926_s14, 2  ;;  %s125_s21 = sand.u32 1, %s2914_s11  }
   0xb   : > { %p2994_p7 = por %p50_p5, %p49_p4  ;;  %s2584_s22 = smul.u32 6144, %s2922_s13 }
   0xc   : > { %s3000_s20 = scalar_select %p34_p6, %s2914_s11, %s36_s17  }
   0xd   : > { %s2583_s23 = smul.u32 384, %s125_s21  ;;  %s138_s26 = scalar_lea.hbm %s3937_s0, %s2584_s22 }
   0xe   : > { %p3007_p9 = pnand %p2592_p8, %p45_p3  ;;  %s126_s30 = scalar_lea.sflag [#allocation8], %s125_s21 }
   0xf   : > { %s129_s28 = scalar_lea.vmem [#allocation7], %s2583_s23  ;;  %s2932_s4 = smov [#allocation7]  }
  0x10   : > { %s139_s29 = sshll.u32 %s129_s28, 4  ;;  %p2846_p10 = pneg %p3007_p9  ;;  %s140_s29 = int_to_ptr.vmem [resolvable:$true] %s139_s29 }
  0x11   : > { %s2857_s3 = scalar_lea.vmem %s140_s29, 6144  ;;  %s2862_s5 = sshll.u32 %s2932_s4, 4  ;;  %s2863_s5 = int_to_ptr.vmem [resolvable:$false] %s2862_s5 }
  0x12   : > { %p2858_p11 = scmp.ne.s32.totalorder %s140_s29, %s2857_s3  ;;  %s2864_s6 = scalar_lea.vmem %s2863_s5, 12288 }
  0x13   : > { %p2865_p0 = scmp.lt.s32.totalorder %s140_s29, %s2863_s5  ;;  %p2866_p1 = scmp.lt.s32.totalorder %s2864_s6, %s2857_s3 }
  0x14   : > { %p2860_p12 = pnand %p2858_p11, %p2846_p10 }
  0x15   : > { %p2867_p2 = por %p2866_p1, %p2865_p0 }
  0x16   : > { %p2861_p13 = pneg %p2860_p12 }
  0x18   : > { %p2868_p3 = pnand %p2867_p2, %p2861_p13 }
  0x1a   : > { %2871 = shalt.err (!%p2868_p3)
}
  0x1b   : > { %s2933_s7 = smov 384   ;;  %s2934_s8 = smov 24  }
  0x1c   : > { %2591 = dma.hbm_to_vmem [thread:$0]  (!%p3007_p9), %s138_s26, 6144, %s140_s29, %s126_s30, %s2933_s7, %s2933_s7, %s2934_s8  }
  0x1d   : > { %p2299_p4 = scmp.ge.s32.totalorder %s2926_s14, 1  ;;  %p147_p5 = scmp.lt.s32.totalorder %s2926_s14, 3 }
  0x1f   : > { %p148_p6 = pnand %p2299_p4, %p147_p5 }
  0x21   : > { %151 = sbr.rel (%p148_p6) target bundleno = 1360 (0x550), region = 28 }
  0x26   : > { %s153_s9 = sand.u32 1, %s2910_s10  }
  0x27   : > { %s2585_s15 = smul.u32 384, %s153_s9  ;;  %s154_s17 = scalar_lea.sflag [#allocation8], %s153_s9 }
  0x29   : > { %s3018_s18 = scalar_lea.vmem [#allocation7], %s2585_s15 }
  0x2a   : > { %2901 = dma.done.wait (%p2994_p7), %s154_s17, 6144  }
  0x2b   : > { %2903 = vsyncadd (%p2994_p7), %s154_s17, 4294961152  ;;  %vm946_vm0 = vcmask 7168   ;;  %vm979_vm1 = vcmask 523264   ;;  %p184_p8 = scmp.lt.s32.totalorder %s2918_s12, 1  ;;  %v2935_v0 = vmov -inf   ;;  %v2936_v1 = vmov 0.0  }
  0x2c   : > { %947 = vst.msk [vmem:[#allocation4] sm:$0xff] %vm946_vm0, %v2935_v0  ;;  %948 = vst.msk [vmem:[#allocation4 + $0x8] sm:$0xff] %vm946_vm0, %v2935_v0  ;;  %v3941_v2 = vmov 0   ;;  %v2656_v3 = vld [vmem:[%s3938_s1 + $0x74] ss:$8 sps:$4 sm:$0xff]   ;;  %v195_v35 = vld [vmem:[%s3018_s18 + $0x8] sm:$0xff] }
  0x2d   : > { %949 = vst.msk [vmem:[#allocation4 + $0x10] sm:$0xff] %vm946_vm0, %v2935_v0  ;;  %950 = vst.msk [vmem:[#allocation4 + $0x18] sm:$0xff] %vm946_vm0, %v2935_v0  ;;  %s4002_s12 = smov (!%p184_p8, %s2918_s12), 1  ;;  %699 = vmatprep.mubr.bf16.mxu1 %v3941_v2  ;;  %v2658_v4 = vld [vmem:[%s3938_s1 + $0x70] ss:$8 sps:$4 sm:$0xff]   ;;  %554 = vmatprep.subr.bf16.mxu0 %v2656_v3  ;;  %v198_v37 = vld [vmem:[%s3018_s18 + $0x20] sm:$0xff] }
  0x2e   : > { %951 = vst.msk [vmem:[#allocation4 + $0x20] sm:$0xff] %vm946_vm0, %v2935_v0  ;;  %952 = vst.msk [vmem:[#allocation4 + $0x28] sm:$0xff] %vm946_vm0, %v2935_v0  ;;  %s2428_s19 = sshll.u32 %s4002_s12, 6  ;;  %v2659_v5 = vld [vmem:[%s3938_s1 + $0x64] ss:$8 sps:$4 sm:$0xff]   ;;  %555 = vmatpush1.bf16.msra.mxu0 %v2658_v4  ;;  %v243_v39 = vpack.c.bf16 %v198_v37, %v195_v35  ;;  %v196_v43 = vld [vmem:[%s3018_s18 + $0x10] sm:$0xff] }
  0x2f   : > { %953 = vst.msk [vmem:[#allocation4 + $0x30] sm:$0xff] %vm946_vm0, %v2935_v0  ;;  %954 = vst.msk [vmem:[#allocation4 + $0x38] sm:$0xff] %vm946_vm0, %v2935_v0  ;;  %s3080_s23 = scalar_lea.vmem %s3939_s2, %s2428_s19  ;;  %v2661_v6 = vld [vmem:[%s3938_s1 + $0x60] ss:$8 sps:$4 sm:$0xff]   ;;  %556 = vmatprep.subr.bf16.mxu0 %v2659_v5  ;;  %v2662_v7 = vld [vmem:[%s3938_s1 + $0x54] ss:$8 sps:$4 sm:$0xff]  }
  0x30   : > { %955 = vst.msk [vmem:[#allocation4 + $0x40] sm:$0xff] %vm946_vm0, %v2935_v0  ;;  %956 = vst.msk [vmem:[#allocation4 + $0x48] sm:$0xff] %vm946_vm0, %v2935_v0  ;;  %v2664_v8 = vld [vmem:[%s3938_s1 + $0x50] ss:$8 sps:$4 sm:$0xff]   ;;  %v2665_v9 = vld [vmem:[%s3938_s1 + $0x44] ss:$8 sps:$4 sm:$0xff]   ;;  %586 = vmatprep.mubr.bf16.mxu0 %v243_v39 }
  0x31   : > { %957 = vst.msk [vmem:[#allocation4 + $0x50] sm:$0xff] %vm946_vm0, %v2935_v0  ;;  %958 = vst.msk [vmem:[#allocation4 + $0x58] sm:$0xff] %vm946_vm0, %v2935_v0  ;;  %v2677_v10 = vld [vmem:[%s3938_s1 + $0x174] ss:$8 sps:$4 sm:$0xff]   ;;  %v2679_v11 = vld [vmem:[%s3938_s1 + $0x170] ss:$8 sps:$4 sm:$0xff]  }
  0x32   : > { %959 = vst.msk [vmem:[#allocation4 + $0x60] sm:$0xff] %vm946_vm0, %v2935_v0  ;;  %960 = vst.msk [vmem:[#allocation4 + $0x68] sm:$0xff] %vm946_vm0, %v2935_v0  ;;  %557 = vmatpush1.bf16.msra.mxu0 %v2661_v6  ;;  %v2667_v12 = vld [vmem:[%s3938_s1 + $0x40] ss:$8 sps:$4 sm:$0xff]   ;;  %v2668_v13 = vld [vmem:[%s3938_s1 + $0x34] ss:$8 sps:$4 sm:$0xff]   ;;  %667 = vmatprep.subr.bf16.mxu1 %v2677_v10 }
  0x33   : > { %961 = vst.msk [vmem:[#allocation4 + $0x70] sm:$0xff] %vm946_vm0, %v2935_v0  ;;  %962 = vst.msk [vmem:[#allocation4 + $0x78] sm:$0xff] %vm946_vm0, %v2935_v0  ;;  %558 = vmatprep.subr.bf16.mxu0 %v2662_v7  ;;  %v2683_v14 = vld [vmem:[%s3938_s1 + $0x164] ss:$8 sps:$4 sm:$0xff]   ;;  %668 = vmatpush1.bf16.msra.mxu1 %v2679_v11  ;;  %v2685_v15 = vld [vmem:[%s3938_s1 + $0x160] ss:$8 sps:$4 sm:$0xff]  }
  0x34   : > { %963 = vst.msk [vmem:[#allocation5] sm:$0xff] %vm946_vm0, %v2936_v1  ;;  %964 = vst.msk [vmem:[#allocation5 + $0x8] sm:$0xff] %vm946_vm0, %v2936_v1  ;;  %669 = vmatprep.subr.bf16.mxu1 %v2683_v14  ;;  %v2670_v16 = vld [vmem:[%s3938_s1 + $0x30] ss:$8 sps:$4 sm:$0xff]   ;;  %v2689_v17 = vld [vmem:[%s3938_s1 + $0x154] ss:$8 sps:$4 sm:$0xff]  }
  0x35   : > { %965 = vst.msk [vmem:[#allocation5 + $0x10] sm:$0xff] %vm946_vm0, %v2936_v1  ;;  %966 = vst.msk [vmem:[#allocation5 + $0x18] sm:$0xff] %vm946_vm0, %v2936_v1  ;;  %v2671_v18 = vld [vmem:[%s3938_s1 + $0x24] ss:$8 sps:$4 sm:$0xff]   ;;  %v2691_v19 = vld [vmem:[%s3938_s1 + $0x150] ss:$8 sps:$4 sm:$0xff]  }
  0x36   : > { %967 = vst.msk [vmem:[#allocation5 + $0x20] sm:$0xff] %vm946_vm0, %v2936_v1  ;;  %968 = vst.msk [vmem:[#allocation5 + $0x28] sm:$0xff] %vm946_vm0, %v2936_v1  ;;  %559 = vmatpush1.bf16.msra.mxu0 %v2664_v8  ;;  %v2695_v20 = vld [vmem:[%s3938_s1 + $0x144] ss:$8 sps:$4 sm:$0xff]   ;;  %v2673_v21 = vld [vmem:[%s3938_s1 + $0x20] ss:$8 sps:$4 sm:$0xff]  }
  0x37   : > { %969 = vst.msk [vmem:[#allocation5 + $0x30] sm:$0xff] %vm946_vm0, %v2936_v1  ;;  %970 = vst.msk [vmem:[#allocation5 + $0x38] sm:$0xff] %vm946_vm0, %v2936_v1  ;;  %560 = vmatprep.subr.bf16.mxu0 %v2665_v9  ;;  %670 = vmatpush1.bf16.msra.mxu1 %v2685_v15  ;;  %v2674_v22 = vld [vmem:[%s3938_s1 + $0x14] ss:$8 sps:$4 sm:$0xff]   ;;  %v2697_v23 = vld [vmem:[%s3938_s1 + $0x140] ss:$8 sps:$4 sm:$0xff]  }
  0x38   : > { %971 = vst.msk [vmem:[#allocation5 + $0x40] sm:$0xff] %vm946_vm0, %v2936_v1  ;;  %972 = vst.msk [vmem:[#allocation5 + $0x48] sm:$0xff] %vm946_vm0, %v2936_v1  ;;  %671 = vmatprep.subr.bf16.mxu1 %v2689_v17  ;;  %v2701_v24 = vld [vmem:[%s3938_s1 + $0x134] ss:$8 sps:$4 sm:$0xff]   ;;  %v2676_v25 = vld [vmem:[%s3938_s1 + $0x10] ss:$8 sps:$4 sm:$0xff]  }
  0x39   : > { %973 = vst.msk [vmem:[#allocation5 + $0x50] sm:$0xff] %vm946_vm0, %v2936_v1  ;;  %974 = vst.msk [vmem:[#allocation5 + $0x58] sm:$0xff] %vm946_vm0, %v2936_v1  ;;  %v2680_v26 = vld [vmem:[%s3938_s1 + $0x4] ss:$8 sps:$4 sm:$0xff]   ;;  %v2703_v27 = vld [vmem:[%s3938_s1 + $0x130] ss:$8 sps:$4 sm:$0xff]  }
  0x3a   : > { %975 = vst.msk [vmem:[#allocation5 + $0x60] sm:$0xff] %vm946_vm0, %v2936_v1  ;;  %976 = vst.msk [vmem:[#allocation5 + $0x68] sm:$0xff] %vm946_vm0, %v2936_v1  ;;  %561 = vmatpush1.bf16.msra.mxu0 %v2667_v12  ;;  %v2707_v28 = vld [vmem:[%s3938_s1 + $0x124] ss:$8 sps:$4 sm:$0xff]   ;;  %v2682_v29 = vld [vmem:[%s3938_s1] ss:$8 sps:$4 sm:$0xff]  }
  0x3b   : > { %977 = vst.msk [vmem:[#allocation5 + $0x70] sm:$0xff] %vm946_vm0, %v2936_v1  ;;  %978 = vst.msk [vmem:[#allocation5 + $0x78] sm:$0xff] %vm946_vm0, %v2936_v1  ;;  %562 = vmatprep.subr.bf16.mxu0 %v2668_v13  ;;  %672 = vmatpush1.bf16.msra.mxu1 %v2691_v19  ;;  %v2686_v30 = vld [vmem:[%s3938_s1 + $0xf4] ss:$8 sps:$4 sm:$0xff]   ;;  %v2709_v31 = vld [vmem:[%s3938_s1 + $0x120] ss:$8 sps:$4 sm:$0xff]  }
  0x3c   : > { %980 = vst.msk [vmem:[#allocation6] sm:$0xff] %vm979_vm1, %v2936_v1  ;;  %981 = vst.msk [vmem:[#allocation6 + $0x8] sm:$0xff] %vm979_vm1, %v2936_v1  ;;  %673 = vmatprep.subr.bf16.mxu1 %v2695_v20  ;;  %v2713_v32 = vld [vmem:[%s3938_s1 + $0x114] ss:$8 sps:$4 sm:$0xff]   ;;  %v2688_v33 = vld [vmem:[%s3938_s1 + $0xf0] ss:$8 sps:$4 sm:$0xff]  }
  0x3d   : > { %982 = vst.msk [vmem:[#allocation6 + $0x10] sm:$0xff] %vm979_vm1, %v2936_v1  ;;  %983 = vst.msk [vmem:[#allocation6 + $0x18] sm:$0xff] %vm979_vm1, %v2936_v1  ;;  %v2692_v34 = vld [vmem:[%s3938_s1 + $0xe4] ss:$8 sps:$4 sm:$0xff]   ;;  %v2715_v36 = vld [vmem:[%s3938_s1 + $0x110] ss:$8 sps:$4 sm:$0xff]  }
  0x3e   : > { %984 = vst.msk [vmem:[#allocation6 + $0x20] sm:$0xff] %vm979_vm1, %v2936_v1  ;;  %985 = vst.msk [vmem:[#allocation6 + $0x28] sm:$0xff] %vm979_vm1, %v2936_v1  ;;  %563 = vmatpush1.bf16.msra.mxu0 %v2670_v16  ;;  %v2719_v38 = vld [vmem:[%s3938_s1 + $0x104] ss:$8 sps:$4 sm:$0xff]   ;;  %v2694_v40 = vld [vmem:[%s3938_s1 + $0xe0] ss:$8 sps:$4 sm:$0xff]  }
  0x3f   : > { %986 = vst.msk [vmem:[#allocation6 + $0x30] sm:$0xff] %vm979_vm1, %v2936_v1  ;;  %987 = vst.msk [vmem:[#allocation6 + $0x38] sm:$0xff] %vm979_vm1, %v2936_v1  ;;  %564 = vmatprep.subr.bf16.mxu0 %v2671_v18  ;;  %674 = vmatpush1.bf16.msra.mxu1 %v2697_v23  ;;  %v2698_v41 = vld [vmem:[%s3938_s1 + $0xd4] ss:$8 sps:$4 sm:$0xff]   ;;  %v2721_v42 = vld [vmem:[%s3938_s1 + $0x100] ss:$8 sps:$4 sm:$0xff]  }
  0x40   : > { %988 = vst.msk [vmem:[#allocation6 + $0x40] sm:$0xff] %vm979_vm1, %v2936_v1  ;;  %989 = vst.msk [vmem:[#allocation6 + $0x48] sm:$0xff] %vm979_vm1, %v2936_v1  ;;  %675 = vmatprep.subr.bf16.mxu1 %v2701_v24  ;;  %v199_v44 = vld [vmem:[%s3018_s18 + $0x28] sm:$0xff]  ;;  %v2700_v45 = vld [vmem:[%s3938_s1 + $0xd0] ss:$8 sps:$4 sm:$0xff]   ;;  %vm847_vm2 = vcmask 519168  }
  0x41   : > { %990 = vst.msk [vmem:[#allocation6 + $0x50] sm:$0xff] %vm979_vm1, %v2936_v1  ;;  %991 = vst.msk [vmem:[#allocation6 + $0x58] sm:$0xff] %vm979_vm1, %v2936_v1  ;;  %v2704_v46 = vld [vmem:[%s3938_s1 + $0xc4] ss:$8 sps:$4 sm:$0xff]   ;;  %v244_v47 = vpack.c.bf16 %v199_v44, %v196_v43  ;;  %v2706_v48 = vld [vmem:[%s3938_s1 + $0xc0] ss:$8 sps:$4 sm:$0xff]  }
  0x42   : > { %992 = vst.msk [vmem:[#allocation6 + $0x60] sm:$0xff] %vm979_vm1, %v2936_v1  ;;  %993 = vst.msk [vmem:[#allocation6 + $0x68] sm:$0xff] %vm979_vm1, %v2936_v1  ;;  %565 = vmatpush1.bf16.msra.mxu0 %v2673_v21  ;;  %v2710_v49 = vld [vmem:[%s3938_s1 + $0xb4] ss:$8 sps:$4 sm:$0xff]   ;;  %v202_v50 = vld [vmem:[%s3018_s18 + $0x40] sm:$0xff] }
  0x43   : > { %994 = vst.msk [vmem:[#allocation6 + $0x70] sm:$0xff] %vm979_vm1, %v2936_v1  ;;  %995 = vst.msk [vmem:[#allocation6 + $0x78] sm:$0xff] %vm979_vm1, %v2936_v1  ;;  %566 = vmatprep.subr.bf16.mxu0 %v2674_v22  ;;  %676 = vmatpush1.bf16.msra.mxu1 %v2703_v27  ;;  %v205_v51 = vld [vmem:[%s3018_s18 + $0x58] sm:$0xff]  ;;  %v2716_v53 = vld [vmem:[%s3938_s1 + $0xa4] ss:$8 sps:$4 sm:$0xff]  }
  0x44   : > { %677 = vmatprep.subr.bf16.mxu1 %v2707_v28  ;;  %v2712_v52 = vld [vmem:[%s3938_s1 + $0xb0] ss:$8 sps:$4 sm:$0xff]   ;;  %v247_v54 = vpack.c.bf16 %v205_v51, %v202_v50  ;;  %v2718_v55 = vld [vmem:[%s3938_s1 + $0xa0] ss:$8 sps:$4 sm:$0xff]   ;;  %v2722_v56 = vld [vmem:[%s3938_s1 + $0x94] ss:$8 sps:$4 sm:$0xff]  }
  0x45   : > { %v208_v57 = vld [vmem:[%s3018_s18 + $0x70] sm:$0xff]  ;;  %v211_v58 = vld [vmem:[%s3018_s18 + $0x88] sm:$0xff]  ;;  %v194_v63 = vld [vmem:[%s3018_s18] sm:$0xff] }
  0x46   : > { %567 = vmatpush1.bf16.msra.mxu0 %v2676_v25  ;;  %v2724_v59 = vld [vmem:[%s3938_s1 + $0x90] ss:$8 sps:$4 sm:$0xff]   ;;  %v2725_v60 = vld [vmem:[%s3938_s1 + $0x84] ss:$8 sps:$4 sm:$0xff]   ;;  %v250_v61 = vpack.c.bf16 %v211_v58, %v208_v57  ;;  %v2727_v62 = vld [vmem:[%s3938_s1 + $0x80] ss:$8 sps:$4 sm:$0xff]  }
  0x47   : > { %568 = vmatprep.subr.bf16.mxu0 %v2680_v26  ;;  %678 = vmatpush1.bf16.msra.mxu1 %v2709_v31  ;;  %v197_v0 = vld [vmem:[%s3018_s18 + $0x18] sm:$0xff]  ;;  %v204_v3 = vld [vmem:[%s3018_s18 + $0x50] sm:$0xff]  ;;  %v214_v4 = vld [vmem:[%s3018_s18 + $0xa0] sm:$0xff] }
  0x48   : > { %679 = vmatprep.subr.bf16.mxu1 %v2713_v32  ;;  %v201_v1 = vld [vmem:[%s3018_s18 + $0x38] sm:$0xff]  ;;  %v242_v6 = vpack.c.bf16 %v197_v0, %v194_v63  ;;  %v200_v9 = vld [vmem:[%s3018_s18 + $0x30] sm:$0xff]  ;;  %v203_v10 = vld [vmem:[%s3018_s18 + $0x48] sm:$0xff] }
  0x49   : > { %v217_v5 = vld [vmem:[%s3018_s18 + $0xb8] sm:$0xff]  ;;  %v246_v7 = vpack.c.bf16 %v204_v3, %v201_v1  ;;  %v207_v11 = vld [vmem:[%s3018_s18 + $0x68] sm:$0xff]  ;;  %v210_v12 = vld [vmem:[%s3018_s18 + $0x80] sm:$0xff]  ;;  %v245_v15 = vpack.c.bf16 %v203_v10, %v200_v9 }
  0x4a   : > { %569 = vmatpush1.bf16.msra.mxu0 %v2682_v29  ;;  %v253_v8 = vpack.c.bf16 %v217_v5, %v214_v4  ;;  %v220_v13 = vld [vmem:[%s3018_s18 + $0xd0] sm:$0xff]  ;;  %v223_v14 = vld [vmem:[%s3018_s18 + $0xe8] sm:$0xff]  ;;  %v249_v16 = vpack.c.bf16 %v210_v12, %v207_v11  ;;  %v206_v18 = vld [vmem:[%s3018_s18 + $0x60] sm:$0xff] }
  0x4b   : > { %570 = vmatprep.subr.bf16.mxu0 %v2686_v30  ;;  %680 = vmatpush1.bf16.msra.mxu1 %v2715_v36  ;;  %v256_v17 = vpack.c.bf16 %v223_v14, %v220_v13  ;;  %v209_v19 = vld [vmem:[%s3018_s18 + $0x78] sm:$0xff]  ;;  %v216_v21 = vld [vmem:[%s3018_s18 + $0xb0] sm:$0xff]  ;;  %v226_v22 = vld [vmem:[%s3018_s18 + $0x100] sm:$0xff] }
  0x4c   : > { %681 = vmatprep.subr.bf16.mxu1 %v2719_v38  ;;  %v213_v20 = vld [vmem:[%s3018_s18 + $0x98] sm:$0xff]  ;;  %v248_v24 = vpack.c.bf16 %v209_v19, %v206_v18  ;;  %v212_v27 = vld [vmem:[%s3018_s18 + $0x90] sm:$0xff]  ;;  %v215_v28 = vld [vmem:[%s3018_s18 + $0xa8] sm:$0xff] }
  0x4d   : > { %v229_v23 = vld [vmem:[%s3018_s18 + $0x118] sm:$0xff]  ;;  %v252_v25 = vpack.c.bf16 %v216_v21, %v213_v20  ;;  %v219_v29 = vld [vmem:[%s3018_s18 + $0xc8] sm:$0xff]  ;;  %v222_v30 = vld [vmem:[%s3018_s18 + $0xe0] sm:$0xff] }
  0x4e   : > { %571 = vmatpush2.bf16.msra.mxu0 %v2688_v33  ;;  %v259_v26 = vpack.c.bf16 %v229_v23, %v226_v22  ;;  %v232_v31 = vld [vmem:[%s3018_s18 + $0x130] sm:$0xff]  ;;  %v235_v32 = vld [vmem:[%s3018_s18 + $0x148] sm:$0xff]  ;;  %v251_v33 = vpack.c.bf16 %v215_v28, %v212_v27  ;;  %v218_v36 = vld [vmem:[%s3018_s18 + $0xc0] sm:$0xff] }
  0x4f   : > { %572 = vmatprep.subr.bf16.mxu0 %v2692_v34  ;;  %682 = vmatpush1.bf16.msra.mxu1 %v2721_v42  ;;  %v255_v34 = vpack.c.bf16 %v222_v30, %v219_v29  ;;  %v262_v35 = vpack.c.bf16 %v235_v32, %v232_v31  ;;  %v221_v37 = vld [vmem:[%s3018_s18 + $0xd8] sm:$0xff]  ;;  %v228_v39 = vld [vmem:[%s3018_s18 + $0x110] sm:$0xff]  ;;  %v230_v51 = vld [vmem:[%s3018_s18 + $0x120] sm:$0xff] }
  0x50   : > { %v225_v38 = vld [vmem:[%s3018_s18 + $0xf8] sm:$0xff]  ;;  %v254_v42 = vpack.c.bf16 %v221_v37, %v218_v36  ;;  %v236_v57 = vld [vmem:[%s3018_s18 + $0x150] sm:$0xff]  ;;  %v239_v58 = vld [vmem:[%s3018_s18 + $0x168] sm:$0xff] }
  0x51   : > { %v258_v43 = vpack.c.bf16 %v228_v39, %v225_v38 }
  0x52   : > { %573 = vmatpush2.bf16.msra.mxu0 %v2694_v40  ;;  %700 = vmatmul.mubr.bf16.vlgmr.msra.gmra.mxu1 %v244_v47  ;;  %v238_v40 = vld [vmem:[%s3018_s18 + $0x160] sm:$0xff]  ;;  %v231_v47 = vld [vmem:[%s3018_s18 + $0x128] sm:$0xff] }
  0x53   : > { %574 = vmatprep.subr.bf16.mxu0 %v2698_v41  ;;  %709 = vmatprep.mubr.bf16.mxu1 %v3941_v2  ;;  %v241_v41 = vld [vmem:[%s3018_s18 + $0x178] sm:$0xff] }
  0x54   : > { %v265_v44 = vpack.c.bf16 %v241_v41, %v238_v40 }
  0x56   : > { %575 = vmatpush2.bf16.msra.mxu0 %v2700_v45  ;;  %v224_v45 = vld [vmem:[%s3018_s18 + $0xf0] sm:$0xff] }
  0x57   : > { %576 = vmatprep.subr.bf16.mxu0 %v2704_v46  ;;  %v227_v46 = vld [vmem:[%s3018_s18 + $0x108] sm:$0xff] }
  0x5a   : > { %577 = vmatpush2.bf16.msra.mxu0 %v2706_v48  ;;  %710 = vmatmul.mubr.bf16.gmra.mxu1 %v247_v54  ;;  %v234_v48 = vld [vmem:[%s3018_s18 + $0x140] sm:$0xff]  ;;  %v240_v54 = vld [vmem:[%s3018_s18 + $0x170] sm:$0xff] }
  0x5b   : > { %578 = vmatprep.subr.bf16.mxu0 %v2710_v49  ;;  %719 = vmatprep.mubr.bf16.mxu1 %v3941_v2  ;;  %v257_v49 = vpack.c.bf16 %v227_v46, %v224_v45  ;;  %v261_v50 = vpack.c.bf16 %v234_v48, %v231_v47 }
  0x5e   : > { %579 = vmatpush2.bf16.msra.mxu0 %v2712_v52  ;;  %v233_v52 = vld [vmem:[%s3018_s18 + $0x138] sm:$0xff] }
  0x5f   : > { %580 = vmatprep.subr.bf16.mxu0 %v2716_v53  ;;  %v237_v53 = vld [vmem:[%s3018_s18 + $0x158] sm:$0xff]  ;;  %s3441_s18 = smov 0  }
  0x62   : > { %581 = vmatpush2.bf16.msra.mxu0 %v2718_v55  ;;  %720 = vmatmul.mubr.bf16.gmra.mxu1 %v250_v61  ;;  %v260_v55 = vpack.c.bf16 %v233_v52, %v230_v51 }
  0x63   : > { %582 = vmatprep.subr.bf16.mxu0 %v2722_v56  ;;  %729 = vmatprep.mubr.bf16.mxu1 %v3941_v2  ;;  %v264_v56 = vpack.c.bf16 %v240_v54, %v237_v53 }
  0x66   : > { %583 = vmatpush2.bf16.msra.mxu0 %v2724_v59  ;;  %v263_v59 = vpack.c.bf16 %v239_v58, %v236_v57 }
  0x67   : > { %584 = vmatprep.subr.bf16.mxu0 %v2725_v60  ;;  %v3940_v60 = vlaneseq }
  0x69   : > { %v3282_v61 = vshrl.u32 %v3940_v60, 7 }
  0x6a   : > { %585 = vmatpush2.bf16.msra.mxu0 %v2727_v62  ;;  %730 = vmatmul.mubr.bf16.gmra.mxu1 %v253_v8 }
  0x6b   : > { %739 = vmatprep.mubr.bf16.mxu1 %v3941_v2  ;;  %v3285_v62 = vadd.s32 8, %v3282_v61  ;;  %v3288_v63 = vadd.s32 16, %v3282_v61  ;;  %v3291_v0 = vadd.s32 24, %v3282_v61  ;;  %v3294_v1 = vadd.s32 32, %v3282_v61 }
  0x6c   : > { %v3297_v3 = vadd.s32 40, %v3282_v61  ;;  %v3300_v4 = vadd.s32 48, %v3282_v61  ;;  %v3303_v5 = vadd.s32 56, %v3282_v61  ;;  %v3312_v8 = vadd.s32 80, %v3282_v61 }
  0x6d   : > { %587 = vmatmul.mubr.bf16.vlgmr.msra.gmra.mxu0 %v242_v6  ;;  %3949 = vst [vmem:[#allocation10_spill] sm:$0xff] %v3291_v0  ;;  %3950 = vst [vmem:[#allocation11_spill] sm:$0xff] %v3294_v1  ;;  %v3306_v6 = vadd.s32 64, %v3282_v61  ;;  %v3315_v9 = vadd.s32 88, %v3282_v61  ;;  %v3318_v10 = vadd.s32 96, %v3282_v61  ;;  %v3321_v11 = vadd.s32 104, %v3282_v61 }
  0x6e   : > { %596 = vmatprep.mubr.bf16.mxu0 %v246_v7  ;;  %3951 = vst [vmem:[#allocation12_spill] sm:$0xff] %v3297_v3  ;;  %3952 = vst [vmem:[#allocation13_spill] sm:$0xff] %v3300_v4  ;;  %v3309_v7 = vadd.s32 72, %v3282_v61  ;;  %v3324_v12 = vadd.s32 112, %v3282_v61  ;;  %v3327_v13 = vadd.s32 120, %v3282_v61 }
  0x6f   : > { %3953 = vst [vmem:[#allocation14_spill] sm:$0xff] %v3303_v5  ;;  %3954 = vst [vmem:[#allocation15_spill] sm:$0xff] %v3306_v6 }
  0x70   : > { %3955 = vst [vmem:[#allocation16_spill] sm:$0xff] %v3309_v7  ;;  %3956 = vst [vmem:[#allocation17_spill] sm:$0xff] %v3312_v8 }
  0x71   : > { %3957 = vst [vmem:[#allocation18_spill] sm:$0xff] %v3315_v9  ;;  %3958 = vst [vmem:[#allocation19_spill] sm:$0xff] %v3318_v10 }
  0x72   : > { %740 = vmatmul.mubr.bf16.gmra.mxu1 %v256_v17  ;;  %3959 = vst [vmem:[#allocation20_spill] sm:$0xff] %v3321_v11  ;;  %3960 = vst [vmem:[#allocation21_spill] sm:$0xff] %v3324_v12 }
  0x73   : > { %749 = vmatprep.mubr.bf16.mxu1 %v3941_v2  ;;  %3961 = vst [vmem:[#allocation22_spill] sm:$0xff] %v3327_v13 }
  0x75   : > { %597 = vmatmul.mubr.bf16.gmra.mxu0 %v245_v15 }
  0x76   : > { %606 = vmatprep.mubr.bf16.mxu0 %v249_v16 }
  0x7a   : > { %750 = vmatmul.mubr.bf16.gmra.mxu1 %v259_v26 }
  0x7b   : > { %759 = vmatprep.mubr.bf16.mxu1 %v3941_v2 }
  0x7d   : > { %607 = vmatmul.mubr.bf16.gmra.mxu0 %v248_v24 }
  0x7e   : > { %616 = vmatprep.mubr.bf16.mxu0 %v252_v25 }
  0x82   : > { %760 = vmatmul.mubr.bf16.gmra.mxu1 %v262_v35 }
  0x83   : > { %769 = vmatprep.mubr.bf16.mxu1 %v3941_v2 }
  0x85   : > { %617 = vmatmul.mubr.bf16.gmra.mxu0 %v251_v33 }
  0x86   : > { %626 = vmatprep.mubr.bf16.mxu0 %v255_v34 }
  0x8a   : > { %770 = vmatmul.mubr.bf16.gmra.mxu1 %v265_v44 }
  0x8d   : > { %627 = vmatmul.mubr.bf16.gmra.mxu0 %v254_v42 }
  0x8e   : > { %636 = vmatprep.mubr.bf16.mxu0 %v258_v43 }
  0x95   : > { %637 = vmatmul.mubr.bf16.gmra.mxu0 %v257_v49 }
  0x96   : > { %646 = vmatprep.mubr.bf16.mxu0 %v261_v50 }
  0x9d   : > { %647 = vmatmul.mubr.bf16.gmra.mxu0 %v260_v55 }
  0x9e   : > { %656 = vmatprep.mubr.bf16.mxu0 %v264_v56 }
  0xa5   : > { %657 = vmatmul.mubr.bf16.gmra.mxu0 %v263_v59 }
 0x112   : > { %v701_v14 = vpop.f32.mrf.mxu1 }
 0x114   : > { %v703_v15 = vpop.f32.mrf.mxu1 }
 0x116   : > { %v705_v16 = vpop.f32.mrf.mxu1 }
 0x118   : > { %v707_v17 = vpop.f32.mrf.mxu1 }
 0x11a   : > { %v711_v18 = vpop.f32.mrf.mxu1 }
 0x11c   : > { %v713_v19 = vpop.f32.mrf.mxu1 }
 0x11e   : > { %v715_v20 = vpop.f32.mrf.mxu1 }
 0x120   : > { %v717_v21 = vpop.f32.mrf.mxu1 }
 0x122   : > { %v721_v22 = vpop.f32.mrf.mxu1 }
 0x124   : > { %v723_v23 = vpop.f32.mrf.mxu1 }
 0x126   : > { %v725_v24 = vpop.f32.mrf.mxu1 }
 0x128   : > { %v727_v26 = vpop.f32.mrf.mxu1 }
 0x12a   : > { %v731_v29 = vpop.f32.mrf.mxu1 }
 0x12c   : > { %v733_v33 = vpop.f32.mrf.mxu1 }
 0x12d   : > { %v588_v25 = vpop.f32.mrf.mxu0 }
 0x12e   : > { %v3329_v27 = vadd.f32 %v701_v14, %v588_v25  ;;  %v735_v37 = vpop.f32.mrf.mxu1 }
 0x12f   : > { %v590_v28 = vpop.f32.mrf.mxu0 }
 0x130   : > { %v2429_v30 = vpack.c.bf16 %v3329_v27, %v3329_v27  ;;  %v704_v31 = vadd.f32 %v703_v15, %v590_v28  ;;  %v737_v42 = vpop.f32.mrf.mxu1 }
 0x131   : > { %v592_v32 = vpop.f32.mrf.mxu0 }
 0x132   : > { %848 = vst.msk [vmem:[#allocation2] sm:$0xf] %vm847_vm2, %v2429_v30  ;;  %v2445_v34 = vpack.c.bf16 %v704_v31, %v704_v31  ;;  %v3334_v35 = vadd.f32 %v705_v16, %v592_v32  ;;  %v741_v46 = vpop.f32.mrf.mxu1 }
 0x133   : > { %v594_v36 = vpop.f32.mrf.mxu0 }
 0x134   : > { %930 = vst.msk [vmem:[#allocation3] sm:$0xf] %vm847_vm2, %v2445_v34  ;;  %v2430_v39 = vpack.c.bf16 %v3334_v35, %v3334_v35  ;;  %v708_v40 = vadd.f32 %v707_v17, %v594_v36  ;;  %v743_v50 = vpop.f32.mrf.mxu1 }
 0x135   : > { %v598_v41 = vpop.f32.mrf.mxu0 }
 0x136   : > { %849 = vst.msk [vmem:[#allocation2 + $0x4] sm:$0xf] %vm847_vm2, %v2430_v39  ;;  %v2446_v43 = vpack.c.bf16 %v708_v40, %v708_v40  ;;  %v3342_v44 = vadd.f32 %v711_v18, %v598_v41  ;;  %v745_v54 = vpop.f32.mrf.mxu1 }
 0x137   : > { %v600_v45 = vpop.f32.mrf.mxu0 }
 0x138   : > { %931 = vst.msk [vmem:[#allocation3 + $0x4] sm:$0xf] %vm847_vm2, %v2446_v43  ;;  %v2431_v47 = vpack.c.bf16 %v3342_v44, %v3342_v44  ;;  %v714_v48 = vadd.f32 %v713_v19, %v600_v45  ;;  %v747_v59 = vpop.f32.mrf.mxu1 }
 0x139   : > { %v602_v49 = vpop.f32.mrf.mxu0 }
 0x13a   : > { %850 = vst.msk [vmem:[#allocation2 + $0x8] sm:$0xf] %vm847_vm2, %v2431_v47  ;;  %v2447_v51 = vpack.c.bf16 %v714_v48, %v714_v48  ;;  %v3348_v52 = vadd.f32 %v715_v20, %v602_v49  ;;  %v751_v17 = vpop.f32.mrf.mxu1 }
 0x13b   : > { %v604_v53 = vpop.f32.mrf.mxu0 }
 0x13c   : > { %932 = vst.msk [vmem:[#allocation3 + $0x8] sm:$0xf] %vm847_vm2, %v2447_v51  ;;  %v2432_v56 = vpack.c.bf16 %v3348_v52, %v3348_v52  ;;  %v718_v57 = vadd.f32 %v717_v21, %v604_v53  ;;  %v753_v30 = vpop.f32.mrf.mxu1 }
 0x13d   : > { %v608_v58 = vpop.f32.mrf.mxu0 }
 0x13e   : > { %851 = vst.msk [vmem:[#allocation2 + $0xc] sm:$0xf] %vm847_vm2, %v2432_v56  ;;  %v2448_v14 = vpack.c.bf16 %v718_v57, %v718_v57  ;;  %v3356_v15 = vadd.f32 %v721_v22, %v608_v58 }
 0x13f   : > { %v610_v16 = vpop.f32.mrf.mxu0 }
 0x140   : > { %3962 = vst [vmem:[#allocation23_spill] sm:$0xff] %v3356_v15  ;;  %933 = vst.msk [vmem:[#allocation3 + $0xc] sm:$0xf] %vm847_vm2, %v2448_v14  ;;  %v2433_v18 = vpack.c.bf16 %v3356_v15, %v3356_v15  ;;  %v724_v19 = vadd.f32 %v723_v23, %v610_v16 }
 0x141   : > { %v612_v20 = vpop.f32.mrf.mxu0 }
 0x142   : > { %852 = vst.msk [vmem:[#allocation2 + $0x10] sm:$0xf] %vm847_vm2, %v2433_v18  ;;  %v2449_v25 = vpack.c.bf16 %v724_v19, %v724_v19  ;;  %v3362_v21 = vadd.f32 %v725_v24, %v612_v20  ;;  %v755_v24 = vpop.f32.mrf.mxu1 }
 0x143   : > { %v614_v28 = vpop.f32.mrf.mxu0 }
 0x144   : > { %3963 = vst [vmem:[#allocation24_spill] sm:$0xff] %v3362_v21  ;;  %934 = vst.msk [vmem:[#allocation3 + $0x10] sm:$0xf] %vm847_vm2, %v2449_v25  ;;  %v2434_v31 = vpack.c.bf16 %v3362_v21, %v3362_v21  ;;  %v728_v32 = vadd.f32 %v727_v26, %v614_v28  ;;  %v757_v48 = vpop.f32.mrf.mxu1 }
 0x145   : > { %v618_v34 = vpop.f32.mrf.mxu0 }
 0x146   : > { %853 = vst.msk [vmem:[#allocation2 + $0x14] sm:$0xf] %vm847_vm2, %v2434_v31  ;;  %v2450_v23 = vpack.c.bf16 %v728_v32, %v728_v32  ;;  %v3370_v36 = vadd.f32 %v731_v29, %v618_v34 }
 0x147   : > { %v620_v39 = vpop.f32.mrf.mxu0 }
 0x148   : > { %935 = vst.msk [vmem:[#allocation3 + $0x14] sm:$0xf] %vm847_vm2, %v2450_v23  ;;  %v2435_v40 = vpack.c.bf16 %v3370_v36, %v3370_v36  ;;  %v734_v41 = vadd.f32 %v733_v33, %v620_v39 }
 0x149   : > { %v622_v43 = vpop.f32.mrf.mxu0 }
 0x14a   : > { %854 = vst.msk [vmem:[#allocation2 + $0x18] sm:$0xf] %vm847_vm2, %v2435_v40  ;;  %v2451_v45 = vpack.c.bf16 %v734_v41, %v734_v41  ;;  %v3376_v47 = vadd.f32 %v735_v37, %v622_v43  ;;  %v761_v37 = vpop.f32.mrf.mxu1 }
 0x14b   : > { %v624_v26 = vpop.f32.mrf.mxu0 }
 0x14c   : > { %936 = vst.msk [vmem:[#allocation3 + $0x18] sm:$0xf] %vm847_vm2, %v2451_v45  ;;  %v2436_v49 = vpack.c.bf16 %v3376_v47, %v3376_v47  ;;  %v738_v51 = vadd.f32 %v737_v42, %v624_v26  ;;  %v763_v20 = vpop.f32.mrf.mxu1 }
 0x14d   : > { %v628_v53 = vpop.f32.mrf.mxu0 }
 0x14e   : > { %855 = vst.msk [vmem:[#allocation2 + $0x1c] sm:$0xf] %vm847_vm2, %v2436_v49  ;;  %v2452_v33 = vpack.c.bf16 %v738_v51, %v738_v51  ;;  %v3384_v56 = vadd.f32 %v741_v46, %v628_v53 }
 0x14f   : > { %v630_v57 = vpop.f32.mrf.mxu0 }
 0x150   : > { %937 = vst.msk [vmem:[#allocation3 + $0x1c] sm:$0xf] %vm847_vm2, %v2452_v33  ;;  %v2437_v58 = vpack.c.bf16 %v3384_v56, %v3384_v56  ;;  %v744_v14 = vadd.f32 %v743_v50, %v630_v57 }
 0x151   : > { %v632_v16 = vpop.f32.mrf.mxu0 }
 0x152   : > { %856 = vst.msk [vmem:[#allocation2 + $0x20] sm:$0xf] %vm847_vm2, %v2437_v58  ;;  %v2453_v18 = vpack.c.bf16 %v744_v14, %v744_v14  ;;  %v3390_v19 = vadd.f32 %v745_v54, %v632_v16  ;;  %v765_v54 = vpop.f32.mrf.mxu1 }
 0x153   : > { %v634_v42 = vpop.f32.mrf.mxu0 }
 0x154   : > { %3964 = vst [vmem:[#allocation25_spill] sm:$0xff] %v3390_v19  ;;  %938 = vst.msk [vmem:[#allocation3 + $0x20] sm:$0xf] %vm847_vm2, %v2453_v18  ;;  %v2438_v25 = vpack.c.bf16 %v3390_v19, %v3390_v19  ;;  %v748_v28 = vadd.f32 %v747_v59, %v634_v42  ;;  %v767_v45 = vpop.f32.mrf.mxu1 }
 0x155   : > { %v638_v31 = vpop.f32.mrf.mxu0 }
 0x156   : > { %857 = vst.msk [vmem:[#allocation2 + $0x24] sm:$0xf] %vm847_vm2, %v2438_v25  ;;  %v2454_v50 = vpack.c.bf16 %v748_v28, %v748_v28  ;;  %v3398_v32 = vadd.f32 %v751_v17, %v638_v31 }
 0x157   : > { %v640_v34 = vpop.f32.mrf.mxu0 }
 0x158   : > { %939 = vst.msk [vmem:[#allocation3 + $0x24] sm:$0xf] %vm847_vm2, %v2454_v50  ;;  %v2439_v23 = vpack.c.bf16 %v3398_v32, %v3398_v32  ;;  %v754_v39 = vadd.f32 %v753_v30, %v640_v34 }
 0x159   : > { %v642_v40 = vpop.f32.mrf.mxu0 }
 0x15a   : > { %858 = vst.msk [vmem:[#allocation2 + $0x28] sm:$0xf] %vm847_vm2, %v2439_v23  ;;  %v2455_v41 = vpack.c.bf16 %v754_v39, %v754_v39  ;;  %v3404_v43 = vadd.f32 %v755_v24, %v642_v40  ;;  %v771_v24 = vpop.f32.mrf.mxu1 }
 0x15b   : > { %v644_v59 = vpop.f32.mrf.mxu0 }
 0x15c   : > { %940 = vst.msk [vmem:[#allocation3 + $0x28] sm:$0xf] %vm847_vm2, %v2455_v41  ;;  %v2440_v26 = vpack.c.bf16 %v3404_v43, %v3404_v43  ;;  %v758_v49 = vadd.f32 %v757_v48, %v644_v59  ;;  %v773_v48 = vpop.f32.mrf.mxu1 }
 0x15d   : > { %v648_v51 = vpop.f32.mrf.mxu0 }
 0x15e   : > { %859 = vst.msk [vmem:[#allocation2 + $0x2c] sm:$0xf] %vm847_vm2, %v2440_v26  ;;  %v2456_v30 = vpack.c.bf16 %v758_v49, %v758_v49  ;;  %v3412_v53 = vadd.f32 %v761_v37, %v648_v51  ;;  %v775_v34 = vpop.f32.mrf.mxu1 }
 0x15f   : > { %v650_v33 = vpop.f32.mrf.mxu0 }
 0x160   : > { %941 = vst.msk [vmem:[#allocation3 + $0x2c] sm:$0xf] %vm847_vm2, %v2456_v30  ;;  %v2441_v57 = vpack.c.bf16 %v3412_v53, %v3412_v53  ;;  %v764_v58 = vadd.f32 %v763_v20, %v650_v33 }
 0x161   : > { %v652_v14 = vpop.f32.mrf.mxu0 }
 0x162   : > { %860 = vst.msk [vmem:[#allocation2 + $0x30] sm:$0xf] %vm847_vm2, %v2441_v57  ;;  %v2457_v16 = vpack.c.bf16 %v764_v58, %v764_v58  ;;  %v3418_v18 = vadd.f32 %v765_v54, %v652_v14 }
 0x163   : > { %v654_v42 = vpop.f32.mrf.mxu0 }
 0x164   : > { %3965 = vst [vmem:[#allocation26_spill] sm:$0xff] %v3418_v18  ;;  %942 = vst.msk [vmem:[#allocation3 + $0x30] sm:$0xf] %vm847_vm2, %v2457_v16  ;;  %v2442_v25 = vpack.c.bf16 %v3418_v18, %v3418_v18  ;;  %v768_v28 = vadd.f32 %v767_v45, %v654_v42  ;;  %v777_v45 = vpop.f32.mrf.mxu1 }
 0x165   : > { %v658_v31 = vpop.f32.mrf.mxu0 }
 0x166   : > { %861 = vst.msk [vmem:[#allocation2 + $0x34] sm:$0xf] %vm847_vm2, %v2442_v25  ;;  %v2458_v20 = vpack.c.bf16 %v768_v28, %v768_v28  ;;  %v3426_v50 = vadd.f32 %v771_v24, %v658_v31 }
 0x167   : > { %v660_v54 = vpop.f32.mrf.mxu0 }
 0x168   : > { %943 = vst.msk [vmem:[#allocation3 + $0x34] sm:$0xf] %vm847_vm2, %v2458_v20  ;;  %v2443_v23 = vpack.c.bf16 %v3426_v50, %v3426_v50  ;;  %v774_v39 = vadd.f32 %v773_v48, %v660_v54 }
 0x169   : > { %v662_v40 = vpop.f32.mrf.mxu0 }
 0x16a   : > { %862 = vst.msk [vmem:[#allocation2 + $0x38] sm:$0xf] %vm847_vm2, %v2443_v23  ;;  %v2459_v41 = vpack.c.bf16 %v774_v39, %v774_v39  ;;  %v3432_v59 = vadd.f32 %v775_v34, %v662_v40 }
 0x16b   : > { %v664_v26 = vpop.f32.mrf.mxu0 }
 0x16c   : > { %944 = vst.msk [vmem:[#allocation3 + $0x38] sm:$0xf] %vm847_vm2, %v2459_v41  ;;  %v2444_v51 = vpack.c.bf16 %v3432_v59, %v3432_v59  ;;  %v778_v30 = vadd.f32 %v777_v45, %v664_v26 }
 0x16e   : > { %863 = vst.msk [vmem:[#allocation2 + $0x3c] sm:$0xf] %vm847_vm2, %v2444_v51  ;;  %v2460_v33 = vpack.c.bf16 %v778_v30, %v778_v30 }
 0x170   : > { %945 = vst.msk [vmem:[#allocation3 + $0x3c] sm:$0xf] %vm847_vm2, %v2460_v33 }
 0x171 LB: >> { %s2938_s17 = smov 64   ;;  %v3966_v38 = vpack.c.bf16 %v3334_v35, %v3329_v27  ;;  %v3967_v21 = vld [vmem:[#allocation24_spill] sm:$0xff]  ;;  %v3968_v15 = vld [vmem:[#allocation23_spill] sm:$0xff]  ;;  %s2461_s19 = sshll.u32 %s2930_s18, 6  ;;  %v3970_v55 = vpack.c.bf16 %v3348_v52, %v3342_v44  ;;  %v3971_v29 = vpack.c.bf16 %v3376_v47, %v3370_v36  ;;  %v3972_v19 = vld [vmem:[#allocation25_spill] sm:$0xff]  ;;  %v3974_v17 = vpack.c.bf16 %v3404_v43, %v3398_v32  ;;  %s2930_s18 = sphi %s3441_s18, %s1035_s18  }
 0x172   : >> { %v3969_v22 = vpack.c.bf16 %v3967_v21, %v3968_v15  ;;  %s3455_s21 = scalar_lea.vmem [#allocation2], %s2461_s19  ;;  %v3973_v46 = vpack.c.bf16 %v3972_v19, %v3384_v56  ;;  %v3975_v18 = vld [vmem:[#allocation26_spill] sm:$0xff]  ;;  %v3977_v49 = vpack.c.bf16 %v3432_v59, %v3426_v50  ;;  %s2401_s22 = sshll.u32 %s2930_s18, 7  ;;  %v3978_v60 = vlaneseq  ;;  %v3980_v4 = vld [vmem:[#allocation13_spill] sm:$0xff]  ;;  %v3981_v1 = vld [vmem:[#allocation11_spill] sm:$0xff] }
 0x173   : >> { %1075 = vrot.lane.b32.xlu0 %v3966_v38, %s2938_s17  ;;  %v3976_v37 = vpack.c.bf16 %v3975_v18, %v3412_v53  ;;  %v3979_v0 = vld [vmem:[#allocation10_spill] sm:$0xff]  ;;  %v3982_v3 = vld [vmem:[#allocation12_spill] sm:$0xff]  ;;  %v3983_v8 = vld [vmem:[#allocation17_spill] sm:$0xff]  ;;  %s3593_s24 = scalar_lea.vmem [#allocation3], %s2461_s19  ;;  %s1035_s18 = sadd.s32 1, %s2930_s18  }
 0x174   : >> { %1079 = vrot.lane.b32.xlu1 %v3969_v22, %s2938_s17  ;;  %v3984_v5 = vld [vmem:[#allocation14_spill] sm:$0xff]  ;;  %v3985_v6 = vld [vmem:[#allocation15_spill] sm:$0xff]  ;;  %v3986_v7 = vld [vmem:[#allocation16_spill] sm:$0xff]  ;;  %p1034_p7 = scmp.ge.s32.totalorder %s1035_s18, 1 }
 0x175   : >> { %v2730_v24 = vld [vmem:[%s3455_s21 + $0x38] sm:$0xff]   ;;  %v2731_v58 = vld [vmem:[%s3455_s21 + $0x30] sm:$0xff]   ;;  %v2732_v16 = vld [vmem:[%s3455_s21 + $0x28] sm:$0xff]  }
 0x176   : >> { %2575 = vmatprep.subr.msk.bf16.mxu0 %vm979_vm1, %v2730_v24  ;;  %v1177_v57 = vsel %vm979_vm1, %v2730_v24, 0  ;;  %v1174_v14 = vsel %vm979_vm1, %v2731_v58, 0  ;;  %v1171_v48 = vsel %vm979_vm1, %v2732_v16, 0  ;;  %v2733_v42 = vld [vmem:[%s3455_s21 + $0x20] sm:$0xff]   ;;  %v2734_v28 = vld [vmem:[%s3455_s21 + $0x18] sm:$0xff]   ;;  %v2735_v20 = vld [vmem:[%s3455_s21 + $0x10] sm:$0xff]  }
 0x177   : >> { %1077 = vrot.lane.b32.xlu0 %v3970_v55, %s2938_s17  ;;  %2512 = vmatpush3.bf16.xpose.msra.mxu0 %v1177_v57  ;;  %v1168_v25 = vsel %vm979_vm1, %v2733_v42, 0  ;;  %v1165_v31 = vsel %vm979_vm1, %v2734_v28, 0  ;;  %v1162_v34 = vsel %vm979_vm1, %v2735_v20, 0  ;;  %v2736_v54 = vld [vmem:[%s3455_s21 + $0x8] sm:$0xff]   ;;  %v2737_v39 = vld [vmem:[%s3455_s21] sm:$0xff]   ;;  %v3987_v12 = vld [vmem:[#allocation21_spill] sm:$0xff] }
 0x178   : >> { %1081 = vrot.lane.b32.xlu1 %v3971_v29, %s2938_s17  ;;  %2576 = vmatprep.subr.msk.bf16.mxu0 %vm979_vm1, %v2731_v58  ;;  %v1159_v23 = vsel %vm979_vm1, %v2736_v54, 0  ;;  %v1156_v40 = vsel %vm979_vm1, %v2737_v39, 0  ;;  %v1278_v58 = vand.u32 127, %v3978_v60  ;;  %v3988_v9 = vld [vmem:[#allocation18_spill] sm:$0xff]  ;;  %v3989_v10 = vld [vmem:[#allocation19_spill] sm:$0xff]  ;;  %v3990_v11 = vld [vmem:[#allocation20_spill] sm:$0xff] }
 0x179   : >> { %v3991_v13 = vld [vmem:[#allocation22_spill] sm:$0xff]  ;;  %v1314_v22 = vld [vmem:[#allocation4 + $0x8] sm:$0xff] }
 0x17a   : >> { %v2740_v38 = vld [vmem:[%s3593_s24 + $0x28] sm:$0xff]   ;;  %v2741_v55 = vld [vmem:[%s3593_s24 + $0x20] sm:$0xff]  }
 0x17b   : >> { %1083 = vrot.lane.b32.xlu0 %v3973_v46, %s2938_s17  ;;  %v1317_v60 = vld [vmem:[#allocation4 + $0x20] sm:$0xff]  ;;  %v3628_v2 = vld [vmem:[#allocation4 + $0x28] sm:$0xff] }
 0x17c   : >> { %1085 = vrot.lane.b32.xlu1 %v3974_v17, %s2938_s17  ;;  %v1325_v18 = vld [vmem:[#allocation4 + $0x60] sm:$0xff]  ;;  %v3676_v19 = vld [vmem:[#allocation4 + $0x68] sm:$0xff] }
 0x17f   : >> { %1087 = vrot.lane.b32.xlu0 %v3976_v37, %s2938_s17  ;;  %2514 = vmatpush3.bf16.xpose.msra.mxu0 %v1174_v14  ;;  %v1279_v14 = vstv %s2401_s22  ;;  %v3609_v37 = vld [vmem:[#allocation4 + $0x18] sm:$0xff] }
 0x180   : >> { %1089 = vrot.lane.b32.xlu1 %v3977_v49, %s2938_s17  ;;  %2577 = vmatprep.subr.msk.bf16.mxu0 %vm979_vm1, %v2732_v16  ;;  %v3509_v16 = vadd.s32 %v1279_v14, %v1278_v58  ;;  %v3615_v49 = vld [vmem:[#allocation4 + $0x30] sm:$0xff] }
 0x182   : >> { %vm1283_vm3 = vcmp.le.s32.totalorder %v3509_v16, %v3288_v63  ;;  %vm1281_vm4 = vcmp.le.s32.totalorder %v3509_v16, %v3282_v61  ;;  %vm1282_vm5 = vcmp.le.s32.totalorder %v3509_v16, %v3285_v62  ;;  %vm1284_vm6 = vcmp.le.s32.totalorder %v3509_v16, %v3979_v0  ;;  %v2742_v0 = vld [vmem:[%s3593_s24 + $0x18] sm:$0xff]  }
 0x183   : >> { %vm1287_vm7 = vcmp.le.s32.totalorder %v3509_v16, %v3980_v4  ;;  %vm1285_vm8 = vcmp.le.s32.totalorder %v3509_v16, %v3981_v1  ;;  %vm1286_vm9 = vcmp.le.s32.totalorder %v3509_v16, %v3982_v3  ;;  %vm1291_vm10 = vcmp.le.s32.totalorder %v3509_v16, %v3983_v8  ;;  %v3639_v4 = vld [vmem:[#allocation4 + $0x50] sm:$0xff]  ;;  %v1321_v8 = vld [vmem:[#allocation4 + $0x40] sm:$0xff] }
 0x184   : >> { %vm1288_vm11 = vcmp.le.s32.totalorder %v3509_v16, %v3984_v5  ;;  %vm1289_vm12 = vcmp.le.s32.totalorder %v3509_v16, %v3985_v6  ;;  %vm1290_vm13 = vcmp.le.s32.totalorder %v3509_v16, %v3986_v7  ;;  %vm1295_vm14 = vcmp.le.s32.totalorder %v3509_v16, %v3987_v12  ;;  %v3659_v12 = vld [vmem:[#allocation4 + $0x70] sm:$0xff] }
 0x185   : >> { %vm1292_vm15 = vcmp.le.s32.totalorder %v3509_v16, %v3988_v9  ;;  %v3650_v9 = vld [vmem:[#allocation4 + $0x48] sm:$0xff] }
 0x187   : >> { %2516 = vmatpush3.bf16.xpose.msra.mxu0 %v1171_v48 }
 0x188   : >> { %2578 = vmatprep.subr.msk.bf16.mxu0 %vm979_vm1, %v2733_v42 }
 0x18f   : >> { %2518 = vmatpush3.bf16.xpose.msra.mxu0 %v1168_v25 }
 0x190   : >> { %2579 = vmatprep.subr.msk.bf16.mxu0 %vm979_vm1, %v2734_v28 }
 0x197   : >> { %2520 = vmatpush3.bf16.xpose.msra.mxu0 %v1165_v31 }
 0x198   : >> { %2580 = vmatprep.subr.msk.bf16.mxu0 %vm979_vm1, %v2735_v20 }
 0x19f   : >> { %2522 = vmatpush3.bf16.xpose.msra.mxu0 %v1162_v34 }
 0x1a0   : >> { %2581 = vmatprep.subr.msk.bf16.mxu0 %vm979_vm1, %v2736_v54 }
 0x1a7   : >> { %2524 = vmatpush3.bf16.xpose.msra.mxu0 %v1159_v23 }
 0x1a8   : >> { %2582 = vmatprep.subr.msk.bf16.mxu0 %vm979_vm1, %v2737_v39 }
 0x1af   : >> { %2526 = vmatpush3.bf16.xpose.msra.mxu0 %v1156_v40 }
 0x1e5   : >> { %v1076_v41 = vpop.permute.xlu0 %1075 }
 0x1e6   : >> { %2527 = vmatprep.mubr.msk.bf16.mxu0 %vm979_vm1, %v1076_v41  ;;  %v1080_v26 = vpop.permute.xlu1 %1079 }
 0x1e9   : >> { %v1078_v45 = vpop.permute.xlu0 %1077 }
 0x1ea   : >> { %2528 = vmatmul.mubr.msk.bf16.vlgmr.msra.gmra.mxu0 %vm979_vm1, %v1078_v45  ;;  %v1082_v51 = vpop.permute.xlu1 %1081 }
 0x1eb   : >> { %2531 = vmatprep.mubr.msk.bf16.mxu0 %vm979_vm1, %v1080_v26 }
 0x1ed   : >> { %v1084_v30 = vpop.permute.xlu0 %1083 }
 0x1ee   : >> { %v1086_v33 = vpop.permute.xlu1 %1085 }
 0x1f1   : >> { %v1088_v24 = vpop.permute.xlu0 %1087 }
 0x1f2   : >> { %2532 = vmatmul.mubr.msk.bf16.gmra.mxu0 %vm979_vm1, %v1082_v51  ;;  %v1090_v57 = vpop.permute.xlu1 %1089 }
 0x1f3   : >> { %2535 = vmatprep.mubr.msk.bf16.mxu0 %vm979_vm1, %v1084_v30 }
 0x1fa   : >> { %2536 = vmatmul.mubr.msk.bf16.gmra.mxu0 %vm979_vm1, %v1086_v33 }
 0x1fb   : >> { %2539 = vmatprep.mubr.msk.bf16.mxu0 %vm979_vm1, %v1088_v24  ;;  %v2939_v24 = vmov 0  }
 0x1fc   : >> { %2728 = vset.pattern.permute.xlu1 %v2939_v24  ;;  %2729 = vset.pattern.permute.xlu0 %v2939_v24 }
 0x202   : >> { %2540 = vmatmul.mubr.msk.bf16.gmra.mxu0 %vm979_vm1, %v1090_v57 }
 0x2aa   : >> { %v2529_v48 = vpop.f32.mrf.mxu0 }
 0x2ab   : >> { %v3513_v42 = vsel %vm1283_vm3, %v2529_v48, -inf  ;;  %vm1293_vm3 = vcmp.le.s32.totalorder %v3509_v16, %v3989_v10 }
 0x2ac   : >> { %1333 = vmax.xlane.f32.xlu0 %v3513_v42  ;;  %v1213_v25 = vpop.f32.mrf.mxu0 }
 0x2ad   : >> { %v3520_v31 = vsel %vm1281_vm4, %v1213_v25, -inf  ;;  %vm1294_vm4 = vcmp.le.s32.totalorder %v3509_v16, %v3990_v11 }
 0x2ae   : >> { %v2530_v28 = vpop.f32.mrf.mxu0 }
 0x2af   : >> { %v3530_v23 = vsel %vm1284_vm6, %v2530_v28, -inf }
 0x2b0   : >> { %1329 = vmax.xlane.f32.xlu0 %v3520_v31  ;;  %v1216_v20 = vpop.f32.mrf.mxu0 }
 0x2b1   : >> { %v3527_v34 = vsel %vm1282_vm5, %v1216_v20, -inf  ;;  %vm1296_vm5 = vcmp.le.s32.totalorder %v3509_v16, %v3991_v13  ;;  %v3596_v16 = vld [vmem:[#allocation4 + $0x10] sm:$0xff]  ;;  %v3661_v13 = vld [vmem:[#allocation4 + $0x58] sm:$0xff] }
 0x2b2   : >> { %1331 = vmax.xlane.f32.xlu1 %v3527_v34  ;;  %v2533_v54 = vpop.f32.mrf.mxu0 }
 0x2b3   : >> { %v3532_v39 = vsel %vm1287_vm7, %v2533_v54, -inf }
 0x2b4   : >> { %1335 = vmax.xlane.f32.xlu0 %v3530_v23  ;;  %v1229_v40 = vpop.f32.mrf.mxu0 }
 0x2b5   : >> { %v3540_v45 = vsel %vm1285_vm8, %v1229_v40, -inf }
 0x2b6   : >> { %1341 = vmax.xlane.f32.xlu1 %v3532_v39  ;;  %v2534_v41 = vpop.f32.mrf.mxu0 }
 0x2b7   : >> { %v3554_v58 = vsel %vm1288_vm11, %v2534_v41, -inf }
 0x2b8   : >> { %v1232_v26 = vpop.f32.mrf.mxu0 }
 0x2b9   : >> { %v3544_v51 = vsel %vm1286_vm9, %v1232_v26, -inf }
 0x2ba   : >> { %1337 = vmax.xlane.f32.xlu1 %v3540_v45  ;;  %1339 = vmax.xlane.f32.xlu0 %v3544_v51  ;;  %v2537_v30 = vpop.f32.mrf.mxu0 }
 0x2bb   : >> { %v3550_v33 = vsel %vm1291_vm10, %v2537_v30, -inf }
 0x2bc   : >> { %v1245_v57 = vpop.f32.mrf.mxu0 }
 0x2bd   : >> { %v3560_v48 = vsel %vm1289_vm12, %v1245_v57, -inf }
 0x2be   : >> { %1343 = vmax.xlane.f32.xlu0 %v3554_v58  ;;  %1349 = vmax.xlane.f32.xlu1 %v3550_v33  ;;  %v2538_v14 = vpop.f32.mrf.mxu0 }
 0x2bf   : >> { %v3572_v40 = vsel %vm1292_vm15, %v2538_v14, -inf }
 0x2c0   : >> { %v1248_v25 = vpop.f32.mrf.mxu0 }
 0x2c1   : >> { %v3566_v28 = vsel %vm1290_vm13, %v1248_v25, -inf  ;;  %v2738_v25 = vld [vmem:[%s3593_s24 + $0x38] sm:$0xff]  }
 0x2c2   : >> { %1345 = vmax.xlane.f32.xlu1 %v3560_v48  ;;  %1347 = vmax.xlane.f32.xlu0 %v3566_v28  ;;  %v2541_v20 = vpop.f32.mrf.mxu0 }
 0x2c3   : >> { %v3570_v54 = vsel %vm1295_vm14, %v2541_v20, -inf  ;;  %2543 = vmatprep.subr.bf16.mxu1 %v2738_v25 }
 0x2c4   : >> { %v1261_v41 = vpop.f32.mrf.mxu0  ;;  %2544 = vmatpush3.bf16.msra.mxu1 %v2738_v25 }
 0x2c5   : >> { %v3580_v30 = vsel %vm1293_vm3, %v1261_v41, -inf }
 0x2c6   : >> { %1357 = vmax.xlane.f32.xlu1 %v3570_v54  ;;  %1351 = vmax.xlane.f32.xlu0 %v3572_v40  ;;  %v2542_v26 = vpop.f32.mrf.mxu0 }
 0x2c7   : >> { %v3588_v14 = vsel %vm1296_vm5, %v2542_v26, -inf  ;;  %v2739_v26 = vld [vmem:[%s3593_s24 + $0x30] sm:$0xff]  }
 0x2c8   : >> { %v1264_v24 = vpop.f32.mrf.mxu0  ;;  %2545 = vmatprep.subr.bf16.mxu1 %v2739_v26 }
 0x2c9   : >> { %v3584_v57 = vsel %vm1294_vm4, %v1264_v24, -inf  ;;  %v3601_v24 = vld [vmem:[#allocation4] sm:$0xff]  ;;  %2546 = vmatpush3.bf16.msra.mxu1 %v2739_v26 }
 0x2ca   : >> { %1353 = vmax.xlane.f32.xlu1 %v3580_v30  ;;  %1355 = vmax.xlane.f32.xlu0 %v3584_v57 }
 0x2cb   : >> { %2547 = vmatprep.subr.bf16.mxu1 %v2740_v38 }
 0x2cd   : >> { %2548 = vmatpush3.bf16.msra.mxu1 %v2740_v38 }
 0x2ce   : >> { %1359 = vmax.xlane.f32.xlu0 %v3588_v14  ;;  %2549 = vmatprep.subr.bf16.mxu1 %v2741_v55 }
 0x2d1   : >> { %2550 = vmatpush3.bf16.msra.mxu1 %v2741_v55 }
 0x2d2   : >> { %2551 = vmatprep.subr.bf16.mxu1 %v2742_v0 }
 0x2d5   : >> { %2552 = vmatpush3.bf16.msra.mxu1 %v2742_v0 }
 0x335   : >> { %v1334_v20 = vpop.xlane.xlu0 %1333 }
 0x336   : >> { %v3599_v41 = vmax.f32 %v3596_v16, %v1334_v20 }
 0x338   : >> { %1948 = vst.msk [vmem:[#allocation4 + $0x10] sm:$0xff] %vm946_vm0, %v3599_v41 }
 0x339   : >> { %v1330_v17 = vpop.xlane.xlu0 %1329 }
 0x33a   : >> { %v3607_v29 = vmax.f32 %v3601_v24, %v1330_v17 }
 0x33b   : >> { %v1332_v25 = vpop.xlane.xlu1 %1331 }
 0x33c   : >> { %1946 = vst.msk [vmem:[#allocation4] sm:$0xff] %vm946_vm0, %v3607_v29  ;;  %v1362_v20 = vmax.f32 %v1314_v22, %v1332_v25  ;;  %1427 = vperm.xlu1 %2728, %v3607_v29   ;;  %v1377_v21 = vsub.f32 %v3601_v24, %v3607_v29 }
 0x33d   : >> { %v1336_v46 = vpop.xlane.xlu0 %1335 }
 0x33e   : >> { %1947 = vst.msk [vmem:[#allocation4 + $0x8] sm:$0xff] %vm946_vm0, %v1362_v20  ;;  %v3619_v17 = vmax.f32 %v3609_v37, %v1336_v46  ;;  %1432 = vperm.xlu0 %2729, %v1362_v20   ;;  %v1378_v6 = vsub.f32 %v1314_v22, %v1362_v20  ;;  %v2744_v20 = vld [vmem:[%s3593_s24 + $0x8] sm:$0xff]  }
 0x33f   : >> { %v1342_v26 = vpop.xlane.xlu1 %1341 }
 0x340   : >> { %1949 = vst.msk [vmem:[#allocation4 + $0x18] sm:$0xff] %vm946_vm0, %v3619_v17  ;;  %v3625_v25 = vmax.f32 %v3615_v49, %v1342_v26  ;;  %1437 = vperm.xlu1 %2728, %v3599_v41   ;;  %v3637_v26 = vld [vmem:[#allocation4 + $0x38] sm:$0xff] }
 0x342   : >> { %1952 = vst.msk [vmem:[#allocation4 + $0x30] sm:$0xff] %vm946_vm0, %v3625_v25 }
 0x343   : >> { %v1338_v38 = vpop.xlane.xlu1 %1337  ;;  %v1340_v46 = vpop.xlane.xlu0 %1339 }
 0x344   : >> { %v1365_v1 = vmax.f32 %v1317_v60, %v1338_v38  ;;  %v3634_v3 = vmax.f32 %v3628_v2, %v1340_v46  ;;  %1442 = vperm.xlu1 %2728, %v3619_v17   ;;  %v2743_v38 = vld [vmem:[%s3593_s24 + $0x10] sm:$0xff]  }
 0x345   : >> { %2553 = vmatprep.subr.bf16.mxu1 %v2743_v38 }
 0x346   : >> { %1950 = vst.msk [vmem:[#allocation4 + $0x20] sm:$0xff] %vm946_vm0, %v1365_v1  ;;  %1951 = vst.msk [vmem:[#allocation4 + $0x28] sm:$0xff] %vm946_vm0, %v3634_v3  ;;  %2554 = vmatpush3.bf16.msra.mxu1 %v2743_v38  ;;  %v1381_v10 = vsub.f32 %v1317_v60, %v1365_v1 }
 0x347   : >> { %v1344_v55 = vpop.xlane.xlu0 %1343  ;;  %v1350_v5 = vpop.xlane.xlu1 %1349  ;;  %2555 = vmatprep.subr.bf16.mxu1 %v2744_v20 }
 0x348   : >> { %v3646_v46 = vmax.f32 %v3637_v26, %v1344_v55  ;;  %v1371_v7 = vmax.f32 %v3639_v4, %v1350_v5  ;;  %1457 = vperm.xlu1 %2728, %v3625_v25   ;;  %v1395_v55 = vmul.f32 1.442695, %v1378_v6  ;;  %v1383_v6 = vsub.f32 %v3615_v49, %v3625_v25  ;;  %v3689_v49 = vld [vmem:[#allocation4 + $0x78] sm:$0xff] }
 0x34a   : >> { %1953 = vst.msk [vmem:[#allocation4 + $0x38] sm:$0xff] %vm946_vm0, %v3646_v46  ;;  %1956 = vst.msk [vmem:[#allocation4 + $0x50] sm:$0xff] %vm946_vm0, %v1371_v7  ;;  %1477 = vperm.xlu0 %2729, %v1371_v7   ;;  %2556 = vmatpush3.bf16.msra.mxu1 %v2744_v20  ;;  %2746 = vpow2.f32 %v1395_v55  ;;  %v1387_v55 = vsub.f32 %v3639_v4, %v1371_v7 }
 0x34b   : >> { %v1346_v0 = vpop.xlane.xlu1 %1345  ;;  %v1348_v22 = vpop.xlane.xlu0 %1347 }
 0x34c   : >> { %v1369_v5 = vmax.f32 %v1321_v8, %v1346_v0  ;;  %1447 = vperm.xlu1 %2728, %v1365_v1   ;;  %v3657_v11 = vmax.f32 %v3650_v9, %v1348_v22  ;;  %v2745_v1 = vld [vmem:[%s3593_s24] sm:$0xff]   ;;  %v1401_v0 = vmul.f32 1.442695, %v1381_v10  ;;  %v1405_v10 = vmul.f32 1.442695, %v1383_v6 }
 0x34d   : >> { %2557 = vmatprep.subr.bf16.mxu1 %v2745_v1  ;;  %v1413_v4 = vmul.f32 1.442695, %v1387_v55 }
 0x34e   : >> { %1954 = vst.msk [vmem:[#allocation4 + $0x40] sm:$0xff] %vm946_vm0, %v1369_v5  ;;  %1955 = vst.msk [vmem:[#allocation4 + $0x48] sm:$0xff] %vm946_vm0, %v3657_v11  ;;  %2558 = vmatpush3.bf16.msra.mxu1 %v2745_v1  ;;  %2748 = vpow2.f32 %v1401_v0  ;;  %v1385_v7 = vsub.f32 %v1321_v8, %v1369_v5  ;;  %v1379_v0 = vsub.f32 %v3596_v16, %v3599_v41 }
 0x34f   : >> { %v1358_v60 = vpop.xlane.xlu1 %1357  ;;  %v1352_v38 = vpop.xlane.xlu0 %1351  ;;  %2750 = vpow2.f32 %v1405_v10 }
 0x350   : >> { %v3670_v22 = vmax.f32 %v3659_v12, %v1358_v60  ;;  %1462 = vperm.xlu1 %2728, %v3646_v46   ;;  %v3674_v15 = vmax.f32 %v3661_v13, %v1352_v38  ;;  %2752 = vpow2.f32 %v1413_v4  ;;  %v1409_v24 = vmul.f32 1.442695, %v1385_v7 }
 0x352   : >> { %1960 = vst.msk [vmem:[#allocation4 + $0x70] sm:$0xff] %vm946_vm0, %v3670_v22  ;;  %1957 = vst.msk [vmem:[#allocation4 + $0x58] sm:$0xff] %vm946_vm0, %v3674_v15 }
 0x353   : >> { %v1354_v25 = vpop.xlane.xlu1 %1353  ;;  %v1356_v20 = vpop.xlane.xlu0 %1355 }
 0x354   : >> { %v1373_v60 = vmax.f32 %v1325_v18, %v1354_v25  ;;  %1452 = vperm.xlu1 %2728, %v3634_v3   ;;  %v3687_v38 = vmax.f32 %v3676_v19, %v1356_v20  ;;  %v1393_v25 = vmul.f32 1.442695, %v1377_v21  ;;  %v1380_v21 = vsub.f32 %v3609_v37, %v3619_v17 }
 0x355   : >> { %v1382_v37 = vsub.f32 %v3628_v2, %v3634_v3  ;;  %v1386_v2 = vsub.f32 %v3650_v9, %v3657_v11 }
 0x356   : >> { %1958 = vst.msk [vmem:[#allocation4 + $0x60] sm:$0xff] %vm946_vm0, %v1373_v60  ;;  %1487 = vperm.xlu0 %2729, %v1373_v60   ;;  %1959 = vst.msk [vmem:[#allocation4 + $0x68] sm:$0xff] %vm946_vm0, %v3687_v38  ;;  %v1389_v10 = vsub.f32 %v1325_v18, %v1373_v60  ;;  %2754 = vpow2.f32 %v1393_v25  ;;  %v1399_v20 = vmul.f32 1.442695, %v1380_v21  ;;  %v1384_v18 = vsub.f32 %v3637_v26, %v3646_v46 }
 0x357   : >> { %v1360_v6 = vpop.xlane.xlu0 %1359  ;;  %v3707_v8 = vpop.eup %2746  ;;  %2756 = vpow2.f32 %v1409_v24  ;;  %v1388_v26 = vsub.f32 %v3661_v13, %v3674_v15 }
 0x358   : >> { %1467 = vperm.xlu1 %2728, %v1369_v5   ;;  %v3697_v1 = vmax.f32 %v3689_v49, %v1360_v6  ;;  %v1397_v5 = vmul.f32 1.442695, %v1379_v0  ;;  %v1417_v16 = vmul.f32 1.442695, %v1389_v10  ;;  %v1407_v17 = vmul.f32 1.442695, %v1384_v18 }
 0x359   : >> { %v1403_v6 = vmul.f32 1.442695, %v1382_v37  ;;  %v1415_v3 = vmul.f32 1.442695, %v1388_v26  ;;  %v1390_v0 = vsub.f32 %v3676_v19, %v3687_v38 }
 0x35a   : >> { %1497 = vperm.xlu0 %2729, %v3670_v22   ;;  %v1392_v29 = vsub.f32 %v3689_v49, %v3697_v1  ;;  %1961 = vst.msk [vmem:[#allocation4 + $0x78] sm:$0xff] %vm946_vm0, %v3697_v1  ;;  %2758 = vpow2.f32 %v1397_v5  ;;  %v3992_v49 = vsub.f32 %v3659_v12, %v3670_v22 }
 0x35b   : >> { %v3713_v41 = vpop.eup %2748  ;;  %2760 = vpow2.f32 %v1417_v16  ;;  %v1419_v9 = vmul.f32 1.442695, %v1390_v0 }
 0x35c   : >> { %1472 = vperm.xlu1 %2728, %v3657_v11   ;;  %v3719_v55 = vpop.eup %2750  ;;  %2762 = vpow2.f32 %v1399_v20 }
 0x35d   : >> { %v3725_v60 = vpop.eup %2752  ;;  %2764 = vpow2.f32 %v1407_v17 }
 0x35e   : >> { %1672 = vperm.xlu0 %2729, %v3707_v8   ;;  %2766 = vpow2.f32 %v1403_v6 }
 0x35f   : >> { %2768 = vpow2.f32 %v1415_v3 }
 0x360   : >> { %1482 = vperm.xlu1 %2728, %v3674_v15   ;;  %v1411_v15 = vmul.f32 1.442695, %v1386_v2 }
 0x362   : >> { %1687 = vperm.xlu0 %2729, %v3713_v41   ;;  %2770 = vpow2.f32 %v1411_v15 }
 0x363   : >> { %v3730_v46 = vpop.eup %2754  ;;  %2772 = vpow2.f32 %v1419_v9 }
 0x364   : >> { %1492 = vperm.xlu1 %2728, %v3687_v38   ;;  %v3733_v4 = vpop.eup %2756 }
 0x366   : >> { %1697 = vperm.xlu0 %2729, %v3719_v55  }
 0x367   : >> { %v3738_v7 = vpop.eup %2758 }
 0x368   : >> { %1502 = vperm.xlu1 %2728, %v3697_v1   ;;  %v3741_v13 = vpop.eup %2760  ;;  %v1421_v1 = vmul.f32 1.442695, %v3992_v49 }
 0x369   : >> { %v3746_v25 = vpop.eup %2762 }
 0x36a   : >> { %1717 = vperm.xlu0 %2729, %v3725_v60   ;;  %v3749_v11 = vpop.eup %2764 }
 0x36b   : >> { %v3752_v24 = vpop.eup %2766 }
 0x36c   : >> { %1667 = vperm.xlu1 %2728, %v3730_v46   ;;  %v3755_v10 = vpop.eup %2768 }
 0x36e   : >> { %1707 = vperm.xlu0 %2729, %v3733_v4  }
 0x36f   : >> { %v3758_v19 = vpop.eup %2770 }
 0x370   : >> { %1677 = vperm.xlu1 %2728, %v3738_v7   ;;  %v3761_v38 = vpop.eup %2772 }
 0x372   : >> { %1727 = vperm.xlu0 %2729, %v3741_v13  }
 0x374   : >> { %1682 = vperm.xlu1 %2728, %v3746_v25  }
 0x378   : >> { %1702 = vperm.xlu1 %2728, %v3749_v11  }
 0x37c   : >> { %1692 = vperm.xlu1 %2728, %v3752_v24  }
 0x380   : >> { %1722 = vperm.xlu1 %2728, %v3755_v10  }
 0x384   : >> { %1712 = vperm.xlu1 %2728, %v3758_v19  }
 0x388   : >> { %1732 = vperm.xlu1 %2728, %v3761_v38  }
 0x3b7   : >> { %v1428_v5 = vpop.permute.xlu1 %1427 }
 0x3b8   : >> { %v1505_v21 = vsub.f32 %v3520_v31, %v1428_v5 }
 0x3b9   : >> { %v1433_v16 = vpop.permute.xlu0 %1432 }
 0x3ba   : >> { %v1521_v20 = vmul.f32 1.442695, %v1505_v21  ;;  %v1506_v18 = vsub.f32 %v3527_v34, %v1433_v16 }
 0x3bb   : >> { %v1438_v37 = vpop.permute.xlu1 %1437 }
 0x3bc   : >> { %v1523_v17 = vmul.f32 1.442695, %v1506_v18  ;;  %v1507_v6 = vsub.f32 %v3513_v42, %v1438_v37  ;;  %2774 = vpow2.f32 %v1521_v20 }
 0x3be   : >> { %2776 = vpow2.f32 %v1523_v17  ;;  %v1525_v26 = vmul.f32 1.442695, %v1507_v6 }
 0x3bf   : >> { %v1443_v2 = vpop.permute.xlu1 %1442 }
 0x3c0   : >> { %2778 = vpow2.f32 %v1525_v26  ;;  %v1508_v3 = vsub.f32 %v3530_v23, %v1443_v2 }
 0x3c2   : >> { %v1527_v15 = vmul.f32 1.442695, %v1508_v3 }
 0x3c3   : >> { %v1458_v0 = vpop.permute.xlu1 %1457 }
 0x3c4   : >> { %2780 = vpow2.f32 %v1527_v15  ;;  %v1511_v31 = vsub.f32 %v3532_v39, %v1458_v0 }
 0x3c5   : >> { %v1478_v9 = vpop.permute.xlu0 %1477 }
 0x3c6   : >> { %v1533_v5 = vmul.f32 1.442695, %v1511_v31  ;;  %v1515_v34 = vsub.f32 %v3550_v33, %v1478_v9 }
 0x3c7   : >> { %v1448_v21 = vpop.permute.xlu1 %1447 }
 0x3c8   : >> { %2782 = vpow2.f32 %v1533_v5  ;;  %v1509_v42 = vsub.f32 %v3540_v45, %v1448_v21  ;;  %v1541_v37 = vmul.f32 1.442695, %v1515_v34 }
 0x3c9   : >> { %v2775_v16 = vpop.eup %2774 }
 0x3ca   : >> { %v1529_v20 = vmul.f32 1.442695, %v1509_v42 }
 0x3cb   : >> { %v2777_v18 = vpop.eup %2776  ;;  %v1463_v17 = vpop.permute.xlu1 %1462 }
 0x3cc   : >> { %2784 = vpow2.f32 %v1529_v20  ;;  %v1512_v23 = vsub.f32 %v3554_v58, %v1463_v17  ;;  %1587 = vadd.xlane.f32.xlu1 %v2777_v18  ;;  %v1761_v6 = vpack.c.bf16 %v2777_v18, %v2775_v16 }
 0x3cd   : >> { %v2779_v26 = vpop.eup %2778  ;;  %2786 = vpow2.f32 %v1541_v37 }
 0x3ce   : >> { %v1535_v39 = vmul.f32 1.442695, %v1512_v23  ;;  %1589 = vadd.xlane.f32.xlu0 %v2779_v26  ;;  %2559 = vmatprep.mubr.bf16.mxu1 %v1761_v6 }
 0x3cf   : >> { %v1453_v33 = vpop.permute.xlu1 %1452 }
 0x3d0   : >> { %2788 = vpow2.f32 %v1535_v39  ;;  %v1510_v2 = vsub.f32 %v3544_v51, %v1453_v33 }
 0x3d1   : >> { %v2781_v45 = vpop.eup %2780  ;;  %v1488_v3 = vpop.permute.xlu0 %1487 }
 0x3d2   : >> { %v1531_v15 = vmul.f32 1.442695, %v1510_v2  ;;  %1585 = vadd.xlane.f32.xlu0 %v2775_v16  ;;  %v1762_v0 = vpack.c.bf16 %v2781_v45, %v2779_v26  ;;  %v1517_v42 = vsub.f32 %v3580_v30, %v1488_v3 }
 0x3d3   : >> { %v1468_v31 = vpop.permute.xlu1 %1467 }
 0x3d4   : >> { %2790 = vpow2.f32 %v1531_v15  ;;  %v1513_v58 = vsub.f32 %v3560_v48, %v1468_v31  ;;  %2560 = vmatmul.mubr.bf16.vlgmr.msra.gmra.mxu1 %v1762_v0  ;;  %v1545_v17 = vmul.f32 1.442695, %v1517_v42 }
 0x3d5   : >> { %v2783_v9 = vpop.eup %2782  ;;  %v1498_v5 = vpop.permute.xlu0 %1497 }
 0x3d6   : >> { %v1537_v34 = vmul.f32 1.442695, %v1513_v58  ;;  %v1519_v21 = vsub.f32 %v3570_v54, %v1498_v5  ;;  %1591 = vadd.xlane.f32.xlu0 %v2781_v45  ;;  %1597 = vadd.xlane.f32.xlu1 %v2783_v9 }
 0x3d7   : >> { %v1473_v51 = vpop.permute.xlu1 %1472 }
 0x3d8   : >> { %2792 = vpow2.f32 %v1537_v34  ;;  %v1549_v20 = vmul.f32 1.442695, %v1519_v21  ;;  %v1514_v16 = vsub.f32 %v3566_v28, %v1473_v51 }
 0x3d9   : >> { %v2785_v18 = vpop.eup %2784 }
 0x3da   : >> { %v1539_v37 = vmul.f32 1.442695, %v1514_v16  ;;  %1593 = vadd.xlane.f32.xlu1 %v2785_v18  ;;  %2794 = vpow2.f32 %v1549_v20  ;;  %v2787_v23 = vpop.eup %2786 }
 0x3db   : >> { %v1483_v48 = vpop.permute.xlu1 %1482 }
 0x3dc   : >> { %2796 = vpow2.f32 %v1539_v37  ;;  %v1516_v6 = vsub.f32 %v3572_v40, %v1483_v48  ;;  %v3798_v48 = vpop.permute.xlu0 %1672 }
 0x3dd   : >> { %v2789_v54 = vpop.eup %2788  ;;  %2798 = vpow2.f32 %v1545_v17 }
 0x3de   : >> { %v1543_v26 = vmul.f32 1.442695, %v1516_v6  ;;  %1599 = vadd.xlane.f32.xlu0 %v2789_v54  ;;  %1605 = vadd.xlane.f32.xlu1 %v2787_v23  ;;  %v1764_v3 = vpack.c.bf16 %v2789_v54, %v2783_v9  ;;  %v1423_v9 = vmul.f32 1.442695, %v1392_v29 }
 0x3df   : >> { %v1493_v30 = vpop.permute.xlu1 %1492 }
 0x3e0   : >> { %2800 = vpow2.f32 %v1543_v26  ;;  %v1518_v39 = vsub.f32 %v3584_v57, %v1493_v30  ;;  %v3802_v6 = vpop.permute.xlu0 %1687 }
 0x3e1   : >> { %v2791_v28 = vpop.eup %2790 }
 0x3e2   : >> { %v1547_v33 = vmul.f32 1.442695, %v1518_v39  ;;  %1595 = vadd.xlane.f32.xlu0 %v2791_v28  ;;  %v1763_v2 = vpack.c.bf16 %v2791_v28, %v2785_v18 }
 0x3e3   : >> { %v1503_v45 = vpop.permute.xlu1 %1502 }
 0x3e4   : >> { %2802 = vpow2.f32 %v1547_v33  ;;  %v1520_v15 = vsub.f32 %v3588_v14, %v1503_v45  ;;  %2563 = vmatprep.mubr.bf16.mxu1 %v1763_v2  ;;  %v3806_v22 = vpop.permute.xlu0 %1697  ;;  %v1554_v33 = vld [vmem:[#allocation5 + $0x8] sm:$0xff]  ;;  %v1555_v45 = vld [vmem:[#allocation5 + $0x10] sm:$0xff] }
 0x3e5   : >> { %v2793_v40 = vpop.eup %2792  ;;  %2564 = vmatmul.mubr.bf16.gmra.mxu1 %v1764_v3  ;;  %v1570_v3 = vmul.f32 %v3707_v8, %v1554_v33 }
 0x3e6   : >> { %v1551_v0 = vmul.f32 1.442695, %v1520_v15  ;;  %1601 = vadd.xlane.f32.xlu1 %v2793_v40 }
 0x3e7   : >> { %v2795_v31 = vpop.eup %2794  ;;  %v3792_v18 = vpop.permute.xlu1 %1667 }
 0x3e8   : >> { %2804 = vpow2.f32 %v1551_v0  ;;  %v3810_v26 = vpop.permute.xlu0 %1717  ;;  %v1571_v0 = vmul.f32 %v3738_v7, %v1555_v45  ;;  %v1563_v45 = vld [vmem:[#allocation5 + $0x50] sm:$0xff] }
 0x3e9   : >> { %v2797_v58 = vpop.eup %2796  ;;  %2806 = vpow2.f32 %v1423_v9  ;;  %v1559_v9 = vld [vmem:[#allocation5 + $0x30] sm:$0xff] }
 0x3ea   : >> { %1613 = vadd.xlane.f32.xlu1 %v2795_v31  ;;  %v1765_v5 = vpack.c.bf16 %v2797_v58, %v2793_v40  ;;  %v2799_v57 = vpop.eup %2798  ;;  %2808 = vpow2.f32 %v1421_v1  ;;  %v1575_v8 = vmul.f32 %v3719_v55, %v1559_v9  ;;  %v1579_v55 = vmul.f32 %v3725_v60, %v1563_v45 }
 0x3eb   : >> { %v3794_v37 = vpop.permute.xlu1 %1677 }
 0x3ec   : >> { %2567 = vmatprep.mubr.bf16.mxu1 %v1765_v5  ;;  %v3814_v39 = vpop.permute.xlu0 %1707 }
 0x3ed   : >> { %v2801_v34 = vpop.eup %2800 }
 0x3ee   : >> { %1607 = vadd.xlane.f32.xlu0 %v2801_v34  ;;  %1609 = vadd.xlane.f32.xlu1 %v2799_v57  ;;  %v1766_v14 = vpack.c.bf16 %v2801_v34, %v2787_v23 }
 0x3ef   : >> { %v3796_v17 = vpop.permute.xlu1 %1682 }
 0x3f0   : >> { %2568 = vmatmul.mubr.bf16.gmra.mxu1 %v1766_v14  ;;  %v3818_v2 = vpop.permute.xlu0 %1727  ;;  %v1556_v14 = vld [vmem:[#allocation5 + $0x18] sm:$0xff] }
 0x3f1   : >> { %v2803_v21 = vpop.eup %2802 }
 0x3f2   : >> { %1603 = vadd.xlane.f32.xlu0 %v2797_v58  ;;  %v1767_v42 = vpack.c.bf16 %v2803_v21, %v2799_v57  ;;  %v1553_v58 = vld [vmem:[#allocation5] sm:$0xff] }
 0x3f3   : >> { %v3800_v23 = vpop.permute.xlu1 %1702  ;;  %v1569_v57 = vmul.f32 %v3730_v46, %v1553_v58 }
 0x3f4   : >> { %2571 = vmatprep.mubr.bf16.mxu1 %v1767_v42  ;;  %v1572_v42 = vmul.f32 %v3746_v25, %v1556_v14 }
 0x3f5   : >> { %v2805_v51 = vpop.eup %2804 }
 0x3f6   : >> { %1615 = vadd.xlane.f32.xlu0 %v2805_v51  ;;  %v1768_v20 = vpack.c.bf16 %v2805_v51, %v2795_v31  ;;  %v3783_v16 = vpop.eup %2806 }
 0x3f7   : >> { %v3789_v29 = vpop.eup %2808  ;;  %v3804_v12 = vpop.permute.xlu1 %1692 }
 0x3f8   : >> { %2572 = vmatmul.mubr.bf16.gmra.mxu1 %v1768_v20  ;;  %v1557_v20 = vld [vmem:[#allocation5 + $0x20] sm:$0xff] }
 0x3f9   : >> { %v1573_v46 = vmul.f32 %v3713_v41, %v1557_v20 }
 0x3fa   : >> { %1611 = vadd.xlane.f32.xlu0 %v2803_v21 }
 0x3fb   : >> { %v3808_v54 = vpop.permute.xlu1 %1722 }
 0x3ff   : >> { %1742 = vperm.xlu1 %2728, %v3783_v16   ;;  %v3812_v30 = vpop.permute.xlu1 %1712 }
 0x403   : >> { %v3816_v28 = vpop.permute.xlu1 %1732 }
 0x410   : >> { %1737 = vperm.xlu0 %2729, %v3789_v29  }
 0x455   : >> { %v1588_v15 = vpop.xlane.xlu1 %1587 }
 0x456   : >> { %v1618_v40 = vadd.f32 %v1588_v15, %v1570_v3  ;;  %v1560_v3 = vld [vmem:[#allocation5 + $0x38] sm:$0xff] }
 0x457   : >> { %v1590_v31 = vpop.xlane.xlu0 %1589  ;;  %v1576_v25 = vmul.f32 %v3749_v11, %v1560_v3  ;;  %v1567_v11 = vld [vmem:[#allocation5 + $0x70] sm:$0xff] }
 0x458   : >> { %1634 = vst.msk [vmem:[#allocation5 + $0x8] sm:$0xff] %vm946_vm0, %v1618_v40  ;;  %v1619_v5 = vadd.f32 %v1590_v31, %v1571_v0  ;;  %v1558_v31 = vld [vmem:[#allocation5 + $0x28] sm:$0xff] }
 0x459   : >> { %v1574_v41 = vmul.f32 %v3752_v24, %v1558_v31 }
 0x45a   : >> { %1635 = vst.msk [vmem:[#allocation5 + $0x10] sm:$0xff] %vm946_vm0, %v1619_v5 }
 0x45b   : >> { %v1586_v34 = vpop.xlane.xlu0 %1585 }
 0x45c   : >> { %v1617_v21 = vadd.f32 %v1586_v34, %v1569_v57  ;;  %v1561_v34 = vld [vmem:[#allocation5 + $0x40] sm:$0xff] }
 0x45d   : >> { %v1577_v60 = vmul.f32 %v3733_v4, %v1561_v34  ;;  %v1562_v4 = vld [vmem:[#allocation5 + $0x48] sm:$0xff] }
 0x45e   : >> { %1633 = vst.msk [vmem:[#allocation5] sm:$0xff] %vm946_vm0, %v1617_v21 }
 0x45f   : >> { %v1598_v7 = vpop.xlane.xlu1 %1597  ;;  %v1592_v51 = vpop.xlane.xlu0 %1591 }
 0x460   : >> { %v1623_v49 = vadd.f32 %v1598_v7, %v1575_v8  ;;  %v1620_v1 = vadd.f32 %v1592_v51, %v1572_v42  ;;  %v1583_v8 = vmul.f32 %v3789_v29, %v1567_v11  ;;  %v1565_v7 = vld [vmem:[#allocation5 + $0x60] sm:$0xff]  ;;  %v1564_v51 = vld [vmem:[#allocation5 + $0x58] sm:$0xff]  ;;  %v1578_v29 = vmul.f32 %v3758_v19, %v1562_v4 }
 0x461   : >> { %v1581_v24 = vmul.f32 %v3741_v13, %v1565_v7  ;;  %v1649_v19 = vld [vmem:[#allocation6] sm:$0xff] }
 0x462   : >> { %1639 = vst.msk [vmem:[#allocation5 + $0x30] sm:$0xff] %vm946_vm0, %v1623_v49  ;;  %1636 = vst.msk [vmem:[#allocation5 + $0x18] sm:$0xff] %vm946_vm0, %v1620_v1  ;;  %v1580_v49 = vmul.f32 %v3755_v10, %v1564_v51  ;;  %v1566_v10 = vld [vmem:[#allocation5 + $0x68] sm:$0xff]  ;;  %v1653_v51 = vld [vmem:[#allocation6 + $0x20] sm:$0xff] }
 0x463   : >> { %v1594_v33 = vpop.xlane.xlu1 %1593 }
 0x464   : >> { %v1621_v15 = vadd.f32 %v1594_v33, %v1573_v46 }
 0x466   : >> { %1637 = vst.msk [vmem:[#allocation5 + $0x20] sm:$0xff] %vm946_vm0, %v1621_v15  ;;  %v1568_v15 = vld [vmem:[#allocation5 + $0x78] sm:$0xff] }
 0x467   : >> { %v1606_v40 = vpop.xlane.xlu1 %1605  ;;  %v1600_v0 = vpop.xlane.xlu0 %1599  ;;  %v1584_v13 = vmul.f32 %v3783_v16, %v1568_v15 }
 0x468   : >> { %v1627_v58 = vadd.f32 %v1606_v40, %v1579_v55  ;;  %v1624_v5 = vadd.f32 %v1600_v0, %v1576_v25  ;;  %v1582_v0 = vmul.f32 %v3761_v38, %v1566_v10 }
 0x46a   : >> { %1643 = vst.msk [vmem:[#allocation5 + $0x50] sm:$0xff] %vm946_vm0, %v1627_v58  ;;  %1640 = vst.msk [vmem:[#allocation5 + $0x38] sm:$0xff] %vm946_vm0, %v1624_v5  ;;  %v1651_v5 = vld [vmem:[#allocation6 + $0x10] sm:$0xff] }
 0x46b   : >> { %v1596_v57 = vpop.xlane.xlu0 %1595 }
 0x46c   : >> { %v1622_v9 = vadd.f32 %v1596_v57, %v1574_v41  ;;  %v1747_v41 = vmul.f32 %v3794_v37, %v1651_v5  ;;  %v1652_v57 = vld [vmem:[#allocation6 + $0x18] sm:$0xff]  ;;  %v1663_v5 = vld [vmem:[#allocation6 + $0x70] sm:$0xff] }
 0x46d   : >> { %v1748_v11 = vmul.f32 %v3796_v17, %v1652_v57  ;;  %v1656_v17 = vld [vmem:[#allocation6 + $0x38] sm:$0xff] }
 0x46e   : >> { %1638 = vst.msk [vmem:[#allocation5 + $0x28] sm:$0xff] %vm946_vm0, %v1622_v9  ;;  %v1745_v9 = vmul.f32 %v3792_v18, %v1649_v19  ;;  %v1655_v18 = vld [vmem:[#allocation6 + $0x30] sm:$0xff]  ;;  %v1752_v4 = vmul.f32 %v3800_v23, %v1656_v17  ;;  %v1660_v23 = vld [vmem:[#allocation6 + $0x58] sm:$0xff]  ;;  %v1978_v17 = vld [vmem:[#allocation5] sm:$0xff] (%p1034_p7) }
 0x46f   : >> { %v1602_v14 = vpop.xlane.xlu1 %1601 }
 0x470   : >> { %v1625_v21 = vadd.f32 %v1602_v14, %v1577_v60  ;;  %v1650_v60 = vld [vmem:[#allocation6 + $0x8] sm:$0xff] }
 0x471   : > { %v1988_v36 = vld [vmem:[#allocation5 + $0x50] sm:$0xff] (%p1034_p7) }
 0x472   : >> { %1641 = vst.msk [vmem:[#allocation5 + $0x40] sm:$0xff] %vm946_vm0, %v1625_v21 }
 0x473   : >> { %v1614_v42 = vpop.xlane.xlu1 %1613 }
 0x474   : >> { %v1631_v20 = vadd.f32 %v1614_v42, %v1583_v8  ;;  %v1746_v8 = vmul.f32 %v3798_v48, %v1650_v60  ;;  %v1664_v60 = vld [vmem:[#allocation6 + $0x78] sm:$0xff] }
 0x476   : >> { %1647 = vst.msk [vmem:[#allocation5 + $0x70] sm:$0xff] %vm946_vm0, %v1631_v20  ;;  %v1751_v20 = vmul.f32 %v3806_v22, %v1655_v18  ;;  %v1659_v22 = vld [vmem:[#allocation6 + $0x50] sm:$0xff] }
 0x477   : >> { %v1610_v1 = vpop.xlane.xlu1 %1609  ;;  %v1608_v46 = vpop.xlane.xlu0 %1607 }
 0x478   : >> { %v1629_v33 = vadd.f32 %v1610_v1, %v1581_v24  ;;  %v1628_v45 = vadd.f32 %v1608_v46, %v1580_v49  ;;  %v1749_v49 = vmul.f32 %v3802_v6, %v1653_v51  ;;  %v1654_v46 = vld [vmem:[#allocation6 + $0x28] sm:$0xff]  ;;  %v1657_v6 = vld [vmem:[#allocation6 + $0x40] sm:$0xff] }
 0x479   : >> { %v1753_v10 = vmul.f32 %v3814_v39, %v1657_v6  ;;  %v1986_v62 = vld [vmem:[#allocation5 + $0x40] sm:$0xff] (%p1034_p7) }
 0x47a   : >> { %1645 = vst.msk [vmem:[#allocation5 + $0x60] sm:$0xff] %vm946_vm0, %v1629_v33  ;;  %1644 = vst.msk [vmem:[#allocation5 + $0x58] sm:$0xff] %vm946_vm0, %v1628_v45 }
 0x47b   : >> { %v1604_v3 = vpop.xlane.xlu0 %1603 }
 0x47c   : >> { %v1626_v55 = vadd.f32 %v1604_v3, %v1578_v29  ;;  %v1750_v29 = vmul.f32 %v3804_v12, %v1654_v46  ;;  %v1982_v46 = vld [vmem:[#allocation5 + $0x20] sm:$0xff] (%p1034_p7) }
 0x47e   : >> { %1642 = vst.msk [vmem:[#allocation5 + $0x48] sm:$0xff] %vm946_vm0, %v1626_v55 }
 0x47f   : >> { %v1616_v25 = vpop.xlane.xlu0 %1615 }
 0x480   : >> { %v1632_v40 = vadd.f32 %v1616_v25, %v1584_v13  ;;  %v1755_v13 = vmul.f32 %v3810_v26, %v1659_v22 }
 0x481   : > { %v1989_v44 = vld [vmem:[#allocation5 + $0x58] sm:$0xff] (%p1034_p7)  ;;  %v1990_v43 = vld [vmem:[#allocation5 + $0x60] sm:$0xff] (%p1034_p7) }
 0x482   : >> { %1648 = vst.msk [vmem:[#allocation5 + $0x78] sm:$0xff] %vm946_vm0, %v1632_v40 }
 0x483   : >> { %v1612_v31 = vpop.xlane.xlu0 %1611 }
 0x484   : >> { %v1630_v58 = vadd.f32 %v1612_v31, %v1582_v0  ;;  %v1658_v0 = vld [vmem:[#allocation6 + $0x48] sm:$0xff]  ;;  %v1756_v31 = vmul.f32 %v3808_v54, %v1660_v23 }
 0x485   : >> { %v1754_v57 = vmul.f32 %v3812_v30, %v1658_v0  ;;  %v1987_v61 = vld [vmem:[#allocation5 + $0x48] sm:$0xff] (%p1034_p7) }
 0x486   : >> { %1646 = vst.msk [vmem:[#allocation5 + $0x68] sm:$0xff] %vm946_vm0, %v1630_v58 }
 0x489   : > { %v1993_v50 = vld [vmem:[#allocation5 + $0x78] sm:$0xff] (%p1034_p7) }
 0x48b   : >> { %v1738_v19 = vpop.permute.xlu0 %1737 }
 0x48d   : > { %v1991_v56 = vld [vmem:[#allocation5 + $0x68] sm:$0xff] (%p1034_p7) }
 0x494   : >> { %v2561_v34 = vpop.f32.mrf.mxu1 }
 0x495   : >> { %v1916_v16 = vadd.f32 %v2561_v34, %v1747_v41  ;;  %v1661_v34 = vld [vmem:[#allocation6 + $0x60] sm:$0xff] }
 0x496   : >> { %v1851_v14 = vpop.f32.mrf.mxu1 }
 0x497   : >> { %1932 = vst.msk [vmem:[#allocation6 + $0x10] sm:$0xff] %vm979_vm1, %v1916_v16  ;;  %v1914_v38 = vadd.f32 %v1851_v14, %v1745_v9  ;;  %v1759_v16 = vmul.f32 %v1738_v19, %v1663_v5  ;;  %v1743_v14 = vpop.permute.xlu1 %1742 }
 0x498   : >> { %v2562_v21 = vpop.f32.mrf.mxu1  ;;  %v1760_v30 = vmul.f32 %v1743_v14, %v1664_v60 }
 0x499   : >> { %1930 = vst.msk [vmem:[#allocation6] sm:$0xff] %vm979_vm1, %v1914_v38  ;;  %v1917_v42 = vadd.f32 %v2562_v21, %v1748_v11  ;;  %v1757_v11 = vmul.f32 %v3818_v2, %v1661_v34  ;;  %v1662_v21 = vld [vmem:[#allocation6 + $0x68] sm:$0xff]  ;;  %v3993_v2 = vmov (%p1034_p7), 0  }
 0x49a   : >> { %v1854_v7 = vpop.f32.mrf.mxu1  ;;  %2811 = vset.pattern.permute.xlu1 (%p1034_p7), %v3993_v2  ;;  %2810 = vset.pattern.permute.xlu0 (%p1034_p7), %v3993_v2 }
 0x49b   : >> { %1933 = vst.msk [vmem:[#allocation6 + $0x18] sm:$0xff] %vm979_vm1, %v1917_v42  ;;  %v1915_v37 = vadd.f32 %v1854_v7, %v1746_v8 }
 0x49d   : >> { %1931 = vst.msk [vmem:[#allocation6 + $0x8] sm:$0xff] %vm979_vm1, %v1915_v37  ;;  %v1758_v37 = vmul.f32 %v3816_v28, %v1662_v21  ;;  %v1980_v28 = vld [vmem:[#allocation5 + $0x10] sm:$0xff] (%p1034_p7) }
 0x49e   : > { %2812 = vrcp.f32 (%p1034_p7), %v1980_v28  ;;  %v1964_v23 = vld [vmem:[#allocation6 + $0x10] sm:$0xff] (%p1034_p7) }
 0x49f   : > { %2814 = vrcp.f32 (%p1034_p7), %v1978_v17 }
 0x4a4   : > { %v1963_v5 = vld [vmem:[#allocation6 + $0x8] sm:$0xff] (%p1034_p7) }
 0x4a5   : >> { %v2565_v24 = vpop.f32.mrf.mxu1 }
 0x4a6   : >> { %v1920_v1 = vadd.f32 %v2565_v24, %v1751_v20  ;;  %v1981_v24 = vld [vmem:[#allocation5 + $0x18] sm:$0xff] (%p1034_p7) }
 0x4a7   : >> { %v1867_v48 = vpop.f32.mrf.mxu1  ;;  %2816 = vrcp.f32 (%p1034_p7), %v1981_v24 }
 0x4a8   : >> { %1936 = vst.msk [vmem:[#allocation6 + $0x30] sm:$0xff] %vm979_vm1, %v1920_v1  ;;  %v1918_v33 = vadd.f32 %v1867_v48, %v1749_v49  ;;  %v1979_v49 = vld [vmem:[#allocation5 + $0x8] sm:$0xff] (%p1034_p7)  ;;  %v1985_v48 = vld [vmem:[#allocation5 + $0x38] sm:$0xff] (%p1034_p7) }
 0x4a9   : >> { %v2566_v45 = vpop.f32.mrf.mxu1  ;;  %2818 = vrcp.f32 (%p1034_p7), %v1979_v49  ;;  %v1983_v1 = vld [vmem:[#allocation5 + $0x28] sm:$0xff] (%p1034_p7) }
 0x4aa   : >> { %1934 = vst.msk [vmem:[#allocation6 + $0x20] sm:$0xff] %vm979_vm1, %v1918_v33  ;;  %v1921_v3 = vadd.f32 %v2566_v45, %v1752_v4  ;;  %2820 = vrcp.f32 (%p1034_p7), %v1983_v1  ;;  %v1984_v4 = vld [vmem:[#allocation5 + $0x30] sm:$0xff] (%p1034_p7) }
 0x4ab   : >> { %v1870_v15 = vpop.f32.mrf.mxu1  ;;  %2822 = vrcp.f32 (%p1034_p7), %v1982_v46  ;;  %v2813_v63 = vpop.eup (%p1034_p7), %2812  ;;  %v1992_v33 = vld [vmem:[#allocation5 + $0x70] sm:$0xff] (%p1034_p7) }
 0x4ac   : >> { %1937 = vst.msk [vmem:[#allocation6 + $0x38] sm:$0xff] %vm979_vm1, %v1921_v3  ;;  %v1919_v55 = vadd.f32 %v1870_v15, %v1750_v29  ;;  %2824 = vrcp.f32 (%p1034_p7), %v1985_v48  ;;  %v2815_v27 = vpop.eup (%p1034_p7), %2814  ;;  %2022 = vperm.xlu1 (%p1034_p7), %2811, %v2813_v63  }
 0x4ad   : > { %2826 = vrcp.f32 (%p1034_p7), %v1984_v4  ;;  %2012 = vperm.xlu0 (%p1034_p7), %2810, %v2815_v27  }
 0x4ae   : >> { %1935 = vst.msk [vmem:[#allocation6 + $0x28] sm:$0xff] %vm979_vm1, %v1919_v55  ;;  %2828 = vrcp.f32 (%p1034_p7), %v1987_v61 }
 0x4af   : > { %2830 = vrcp.f32 (%p1034_p7), %v1986_v62 }
 0x4b0   : >> { %v2569_v25 = vpop.f32.mrf.mxu1  ;;  %2832 = vrcp.f32 (%p1034_p7), %v1989_v44 }
 0x4b1   : >> { %v1924_v40 = vadd.f32 %v2569_v25, %v1755_v13  ;;  %2834 = vrcp.f32 (%p1034_p7), %v1988_v36  ;;  %v1962_v25 = vld [vmem:[#allocation6] sm:$0xff] (%p1034_p7) }
 0x4b2   : >> { %v1883_v12 = vpop.f32.mrf.mxu1  ;;  %2836 = vrcp.f32 (%p1034_p7), %v1991_v56 }
 0x4b3   : >> { %1940 = vst.msk [vmem:[#allocation6 + $0x50] sm:$0xff] %vm979_vm1, %v1924_v40  ;;  %v1922_v58 = vadd.f32 %v1883_v12, %v1753_v10  ;;  %2838 = vrcp.f32 (%p1034_p7), %v1990_v43  ;;  %v1969_v21 = vld [vmem:[#allocation6 + $0x38] sm:$0xff] (%p1034_p7) }
 0x4b4   : >> { %v2570_v41 = vpop.f32.mrf.mxu1  ;;  %v2817_v35 = vpop.eup (%p1034_p7), %2816  ;;  %2840 = vrcp.f32 (%p1034_p7), %v1993_v50 }
 0x4b5   : >> { %1938 = vst.msk [vmem:[#allocation6 + $0x40] sm:$0xff] %vm979_vm1, %v1922_v58  ;;  %v1925_v26 = vadd.f32 %v2570_v41, %v1756_v31  ;;  %2027 = vperm.xlu1 (%p1034_p7), %2811, %v2817_v35   ;;  %2842 = vrcp.f32 (%p1034_p7), %v1992_v33  ;;  %v1965_v31 = vld [vmem:[#allocation6 + $0x18] sm:$0xff] (%p1034_p7) }
 0x4b6   : >> { %v1886_v9 = vpop.f32.mrf.mxu1  ;;  %v2819_v52 = vpop.eup (%p1034_p7), %2818 }
 0x4b7   : >> { %1941 = vst.msk [vmem:[#allocation6 + $0x58] sm:$0xff] %vm979_vm1, %v1925_v26  ;;  %v1923_v39 = vadd.f32 %v1886_v9, %v1754_v57  ;;  %v2821_v47 = vpop.eup (%p1034_p7), %2820  ;;  %2017 = vperm.xlu0 (%p1034_p7), %2810, %v2819_v52   ;;  %v1967_v9 = vld [vmem:[#allocation6 + $0x28] sm:$0xff] (%p1034_p7) }
 0x4b8   : >> { %v2573_v54 = vpop.f32.mrf.mxu1  ;;  %v2823_v32 = vpop.eup (%p1034_p7), %2822 }
 0x4b9   : >> { %1939 = vst.msk [vmem:[#allocation6 + $0x48] sm:$0xff] %vm979_vm1, %v1923_v39  ;;  %v1928_v38 = vadd.f32 %v2573_v54, %v1759_v16  ;;  %2037 = vperm.xlu1 (%p1034_p7), %2811, %v2821_v47   ;;  %v2825_v53 = vpop.eup (%p1034_p7), %2824  ;;  %v1966_v39 = vld [vmem:[#allocation6 + $0x20] sm:$0xff] (%p1034_p7) }
 0x4ba   : >> { %v1899_v8 = vpop.f32.mrf.mxu1  ;;  %v2827_v59 = vpop.eup (%p1034_p7), %2826  ;;  %v1972_v61 = vld [vmem:[#allocation6 + $0x50] sm:$0xff] (%p1034_p7) }
 0x4bb   : >> { %1944 = vst.msk [vmem:[#allocation6 + $0x70] sm:$0xff] %vm979_vm1, %v1928_v38  ;;  %v1926_v42 = vadd.f32 %v1899_v8, %v1757_v11  ;;  %2032 = vperm.xlu0 (%p1034_p7), %2810, %v2823_v32   ;;  %v2829_v45 = vpop.eup (%p1034_p7), %2828 }
 0x4bc   : >> { %v2574_v7 = vpop.f32.mrf.mxu1  ;;  %v2831_v29 = vpop.eup (%p1034_p7), %2830  ;;  %v1970_v28 = vld [vmem:[#allocation6 + $0x40] sm:$0xff] (%p1034_p7) }
 0x4bd   : >> { %1942 = vst.msk [vmem:[#allocation6 + $0x60] sm:$0xff] %vm979_vm1, %v1926_v42  ;;  %v1929_v18 = vadd.f32 %v2574_v7, %v1760_v30  ;;  %1037 = sbr.rel (!%p1034_p7) target bundleno = 369 (0x171), region = 79  ;;  %2047 = vperm.xlu1 (%p1034_p7), %2811, %v2825_v53   ;;  %v2833_v3 = vpop.eup (%p1034_p7), %2832  ;;  %v1968_v30 = vld [vmem:[#allocation6 + $0x30] sm:$0xff] (%p1034_p7) }
 0x4be   : >> { %v1902_v51 = vpop.f32.mrf.mxu1  ;;  %v2835_v15 = vpop.eup (%p1034_p7), %2834  ;;  %v1973_v48 = vld [vmem:[#allocation6 + $0x58] sm:$0xff] (%p1034_p7) }
 0x4bf   : >> { %1945 = vst.msk [vmem:[#allocation6 + $0x78] sm:$0xff] %vm979_vm1, %v1929_v18  ;;  %v1927_v20 = vadd.f32 %v1902_v51, %v1758_v37  ;;  %2042 = vperm.xlu0 (%p1034_p7), %2810, %v2827_v59   ;;  %v2837_v22 = vpop.eup (%p1034_p7), %2836 }
 0x4c0   : > { %v2839_v55 = vpop.eup (%p1034_p7), %2838 }
 0x4c1   : >> { %1943 = vst.msk [vmem:[#allocation6 + $0x68] sm:$0xff] %vm979_vm1, %v1927_v20  ;;  %2057 = vperm.xlu1 (%p1034_p7), %2811, %v2829_v45   ;;  %v2841_v6 = vpop.eup (%p1034_p7), %2840  ;;  %v1971_v20 = vld [vmem:[#allocation6 + $0x48] sm:$0xff] (%p1034_p7) }
 0x4c2   : > { %v2843_v13 = vpop.eup %2842  ;;  %v1976_v45 = vld [vmem:[#allocation6 + $0x70] sm:$0xff] }
 0x4c3   : > { %2052 = vperm.xlu0 %2810, %v2831_v29  }
 0x4c4   : > { %v1974_v47 = vld [vmem:[#allocation6 + $0x60] sm:$0xff] }
 0x4c5   : > { %2067 = vperm.xlu1 %2811, %v2833_v3  }
 0x4c6   : > { %v1977_v59 = vld [vmem:[#allocation6 + $0x78] sm:$0xff] }
 0x4c7   : > { %2062 = vperm.xlu0 %2810, %v2835_v15  }
 0x4c8   : > { %v1975_v52 = vld [vmem:[#allocation6 + $0x68] sm:$0xff] }
 0x4c9   : > { %2077 = vperm.xlu1 %2811, %v2837_v22  }
 0x4cb   : > { %2072 = vperm.xlu0 %2810, %v2839_v55  }
 0x4cd   : > { %2087 = vperm.xlu1 %2811, %v2841_v6  }
 0x4cf   : > { %2082 = vperm.xlu0 %2810, %v2843_v13  }
 0x527   : > { %v2023_v10 = vpop.permute.xlu1 %2022 }
 0x528   : > { %v2092_v40 = vmul.f32 %v2023_v10, %v1964_v23  ;;  %v2013_v0 = vpop.permute.xlu0 %2012 }
 0x529   : > { %v2090_v12 = vmul.f32 %v2013_v0, %v1962_v25 }
 0x52a   : > { %v2465_v58 = vpack.c.bf16 %v2092_v40, %v2092_v40 }
 0x52b   : > { %v2463_v19 = vpack.c.bf16 %v2090_v12, %v2090_v12 }
 0x52c   : > { %2172 = vst.msk [vmem:[%s3080_s23 + $0x8] sm:$0xf] %vm847_vm2, %v2465_v58 }
 0x52d   : > { %2170 = vst.msk [vmem:[%s3080_s23] sm:$0xf] %vm847_vm2, %v2463_v19 }
 0x530   : > { %v2028_v41 = vpop.permute.xlu1 %2027 }
 0x531   : > { %v2093_v57 = vmul.f32 %v2028_v41, %v1965_v31 }
 0x532   : > { %v2018_v26 = vpop.permute.xlu0 %2017 }
 0x533   : > { %v2091_v34 = vmul.f32 %v2018_v26, %v1963_v5  ;;  %v2466_v16 = vpack.c.bf16 %v2093_v57, %v2093_v57 }
 0x534   : > { %v2038_v14 = vpop.permute.xlu1 %2037 }
 0x535   : > { %v2464_v60 = vpack.c.bf16 %v2091_v34, %v2091_v34  ;;  %2173 = vst.msk [vmem:[%s3080_s23 + $0xc] sm:$0xf] %vm847_vm2, %v2466_v16  ;;  %v2095_v54 = vmul.f32 %v2038_v14, %v1967_v9 }
 0x536   : > { %v2033_v11 = vpop.permute.xlu0 %2032 }
 0x537   : > { %2171 = vst.msk [vmem:[%s3080_s23 + $0x4] sm:$0xf] %vm847_vm2, %v2464_v60  ;;  %v2094_v38 = vmul.f32 %v2033_v11, %v1966_v39  ;;  %v2468_v8 = vpack.c.bf16 %v2095_v54, %v2095_v54 }
 0x538   : > { %v2048_v7 = vpop.permute.xlu1 %2047 }
 0x539   : > { %v2467_v42 = vpack.c.bf16 %v2094_v38, %v2094_v38  ;;  %2175 = vst.msk [vmem:[%s3080_s23 + $0x14] sm:$0xf] %vm847_vm2, %v2468_v8  ;;  %v2097_v37 = vmul.f32 %v2048_v7, %v1969_v21 }
 0x53a   : > { %v2043_v18 = vpop.permute.xlu0 %2042 }
 0x53b   : > { %2174 = vst.msk [vmem:[%s3080_s23 + $0x10] sm:$0xf] %vm847_vm2, %v2467_v42  ;;  %v2096_v51 = vmul.f32 %v2043_v18, %v1968_v30  ;;  %v2470_v2 = vpack.c.bf16 %v2097_v37, %v2097_v37 }
 0x53c   : > { %v2058_v24 = vpop.permute.xlu1 %2057 }
 0x53d   : > { %v2469_v17 = vpack.c.bf16 %v2096_v51, %v2096_v51  ;;  %2177 = vst.msk [vmem:[%s3080_s23 + $0x1c] sm:$0xf] %vm847_vm2, %v2470_v2  ;;  %v2099_v49 = vmul.f32 %v2058_v24, %v1971_v20 }
 0x53e   : > { %v2053_v1 = vpop.permute.xlu0 %2052 }
 0x53f   : > { %2176 = vst.msk [vmem:[%s3080_s23 + $0x18] sm:$0xf] %vm847_vm2, %v2469_v17  ;;  %v2098_v46 = vmul.f32 %v2053_v1, %v1970_v28  ;;  %v2472_v4 = vpack.c.bf16 %v2099_v49, %v2099_v49 }
 0x540   : > { %v2068_v63 = vpop.permute.xlu1 %2067 }
 0x541   : > { %v2471_v62 = vpack.c.bf16 %v2098_v46, %v2098_v46  ;;  %2179 = vst.msk [vmem:[%s3080_s23 + $0x24] sm:$0xf] %vm847_vm2, %v2472_v4  ;;  %v2101_v27 = vmul.f32 %v2068_v63, %v1973_v48 }
 0x542   : > { %v2063_v35 = vpop.permute.xlu0 %2062 }
 0x543   : > { %2178 = vst.msk [vmem:[%s3080_s23 + $0x20] sm:$0xf] %vm847_vm2, %v2471_v62  ;;  %v2100_v44 = vmul.f32 %v2063_v35, %v1972_v61  ;;  %v2474_v36 = vpack.c.bf16 %v2101_v27, %v2101_v27 }
 0x544   : > { %v2078_v32 = vpop.permute.xlu1 %2077 }
 0x545   : > { %v2473_v56 = vpack.c.bf16 %v2100_v44, %v2100_v44  ;;  %2181 = vst.msk [vmem:[%s3080_s23 + $0x2c] sm:$0xf] %vm847_vm2, %v2474_v36  ;;  %v2103_v43 = vmul.f32 %v2078_v32, %v1975_v52 }
 0x546   : > { %v2073_v53 = vpop.permute.xlu0 %2072 }
 0x547   : > { %2180 = vst.msk [vmem:[%s3080_s23 + $0x28] sm:$0xf] %vm847_vm2, %v2473_v56  ;;  %v2102_v50 = vmul.f32 %v2073_v53, %v1974_v47  ;;  %v2476_v33 = vpack.c.bf16 %v2103_v43, %v2103_v43 }
 0x548   : > { %v2088_v3 = vpop.permute.xlu1 %2087 }
 0x549   : > { %v2475_v29 = vpack.c.bf16 %v2102_v50, %v2102_v50  ;;  %2183 = vst.msk [vmem:[%s3080_s23 + $0x34] sm:$0xf] %vm847_vm2, %v2476_v33  ;;  %v2105_v15 = vmul.f32 %v2088_v3, %v1977_v59 }
 0x54a   : > { %v2083_v22 = vpop.permute.xlu0 %2082 }
 0x54b   : > { %2182 = vst.msk [vmem:[%s3080_s23 + $0x30] sm:$0xf] %vm847_vm2, %v2475_v29  ;;  %v2104_v55 = vmul.f32 %v2083_v22, %v1976_v45  ;;  %v2478_v6 = vpack.c.bf16 %v2105_v15, %v2105_v15 }
 0x54d   : > { %v2477_v13 = vpack.c.bf16 %v2104_v55, %v2104_v55  ;;  %2185 = vst.msk [vmem:[%s3080_s23 + $0x3c] sm:$0xf] %vm847_vm2, %v2478_v6 }
 0x54f   : > { %2184 = vst.msk [vmem:[%s3080_s23 + $0x38] sm:$0xf] %vm847_vm2, %v2477_v13 }
 0x550 PF: > { %s15_s14 = sadd.s32 1, %s2926_s14   ;;  %s3994_s9 = smov %s2910_s10 }
 0x551   : > { %p12_p9 = scmp.ge.s32.totalorder %s15_s14, 4   ;;  %s3995_s10 = smov %s2914_s11 }
 0x552   : > { %s3996_s11 = smov %s3000_s20  ;;  %s3997_s12 = smov %s2922_s13 }
 0x553   : > { %s3998_s13 = smov %s4000_s16  ;;  %14 = sbr.rel (!%p12_p9) target bundleno = 4 (0x4), region = 90 }
 0x558   :  { %2216 = vsyncpa [#allocation8], 1 }
 0x559   :  { %2218 = vsyncpa [#allocation8 + $0x1], 1 }

</bundles_post_ra>
